<compile_context>
chip_gen: v5e
topology: v5e:2x2
jax: 0.10.0
libtpu: 0.0.40
codegen_flags: <defaults>
</compile_context>

<pallas_src>
from collections import defaultdict

import numpy as np
import jax
import jax.numpy as jnp
from jax import lax
from jax.experimental import pallas as pl
from jax.experimental.pallas import tpu as pltpu

# -------------------- config (defaults of GraphSPICEEmbeddingLoss.__init__) ----
FT_INTER_MARGIN = 1.5
SP_INTER_MARGIN = 0.2
FT_INTRA_MARGIN = 1.0
SP_INTRA_MARGIN = 0.0
EPS = 0.001
FT_LOSS_W = dict(inter=1.0, intra=1.0, reg=0.1)
SP_LOSS_W = dict(inter=1.0, intra=1.0)

N_MAX = 128        # padded points per (batch, class) group (lanes)
C_MAX = 8          # padded cluster count per group (sublanes of the hot tiles)
OUT_W = 128        # lane-dense output tile width
CLASSES = (0, 1, 2, 3)   # semantic class 4 is always skipped by combine_multiclass

D_SP = 3
D_FT = 16

# packed row layout (features along sublanes, points along lanes)
ROW_SP = 0          # 8 rows: spatial embedding (3 real + 5 zero pad)
ROW_FT = 8          # 16 rows: feature embedding
ROW_SPCOV = 24
ROW_FTCOV = 25
ROW_OCC = 26
ROW_VALID = 27
ROW_OH = 32         # 8 rows: one-hot cluster membership (cluster-major)
RK = 40             # total packed rows (multiple of 8)


# ----------------------------- Pallas kernel -----------------------------------
def _mat_nt(a, b):
    # a: (M, D), b: (K, D)  ->  a @ b^T : (M, K)   (MXU, f32 accumulation)
    return lax.dot_general(a, b, (((1,), (1,)), ((), ())),
                           preferred_element_type=jnp.float32)


def gs_group_kernel(x_ref, out_ref):
    x = x_ref[0]                                         # (RK, N)
    C = C_MAX

    oh     = x[ROW_OH:ROW_OH + C]                        # (C, N) one-hot, cluster-major
    embT   = x[ROW_SP:ROW_FT + D_FT]                     # (24, N) = [sp | pad | ft]
    spT    = x[ROW_SP:ROW_SP + 8]                        # (8, N)  (5 zero rows)
    ftT    = x[ROW_FT:ROW_FT + D_FT]                     # (16, N)
    sp_cov = jnp.maximum(x[ROW_SPCOV:ROW_SPCOV + 1], EPS)   # (1, N)
    ft_cov = jnp.maximum(x[ROW_FTCOV:ROW_FTCOV + 1], EPS)   # (1, N)
    occ    = x[ROW_OCC:ROW_OCC + 1]                      # (1, N)
    valid  = x[ROW_VALID:ROW_VALID + 1]                  # (1, N)

    # ---- cluster bookkeeping (pure VPU/XLU; no MXU) ----
    counts_c1 = jnp.sum(oh, axis=1, keepdims=True)       # (C, 1)
    active_c1 = (counts_c1 > 0.5).astype(jnp.float32)
    safe_c1 = jnp.maximum(counts_c1, 1.0)
    inv_cnt = 1.0 / safe_c1                              # (C, 1) — reused 4x below
    n_active = jnp.sum(active_c1, keepdims=True)         # (1, 1)
    inv_nact = 1.0 / jnp.maximum(n_active, 1.0)

    ii = lax.broadcasted_iota(jnp.int32, (C, C), 0)
    jj = lax.broadcasted_iota(jnp.int32, (C, C), 1)
    eye = (ii == jj).astype(jnp.float32)
    triu = (jj > ii).astype(jnp.float32)
    active_1c = jnp.sum(eye * active_c1, axis=0, keepdims=True)   # (1, C) (no transpose)

    # ---- cluster centroids: one fused MXU matmul over [sp|ft] rows ----
    cent = lax.dot_general(oh, embT, (((1,), (1,)), ((), ())),
                           preferred_element_type=jnp.float32) * inv_cnt   # (C, 24)
    sp_cent = cent[:, ROW_SP:ROW_SP + 8]                 # (C, 8)  (zero-padded cols)
    ft_cent = cent[:, ROW_FT:ROW_FT + D_FT]              # (C, 16)

    # ---- intra-cluster hinge (direct x - mu difference, cluster-major) ----
    muT = lax.dot_general(cent, oh, (((0,), (0,)), ((), ())),
                          preferred_element_type=jnp.float32)    # (24, N)
    diff = embT - muT + 1e-8
    d_sp_own = jnp.sqrt(jnp.sum(diff[0:8] ** 2, axis=0, keepdims=True))      # (1, N)
    d_ft_own = jnp.sqrt(jnp.sum(diff[8:8 + D_FT] ** 2, axis=0, keepdims=True))

    def intra(d_own, margin):
        h = jnp.maximum(d_own - margin, 0.0) ** 2                    # (1, N)
        cmean = jnp.sum(oh * h, axis=1, keepdims=True) * inv_cnt     # (C, 1)
        return jnp.sum(cmean * active_c1, keepdims=True) * inv_nact

    ft_intra = intra(d_ft_own, FT_INTRA_MARGIN)
    sp_intra = intra(d_sp_own, SP_INTRA_MARGIN)

    # ---- inter-cluster hinge over active upper-triangular centroid pairs ----
    c2_sp = jnp.sum(sp_cent ** 2, axis=1, keepdims=True)             # (C, 1)
    c2_ft = jnp.sum(ft_cent ** 2, axis=1, keepdims=True)

    def inter(cent_cd, c2, margin):
        gram = _mat_nt(cent_cd, cent_cd)                             # (C, C)
        sq_1c = jnp.sum(gram * eye, axis=0, keepdims=True)           # (1, C) diag
        d2 = c2 + sq_1c - 2.0 * gram
        d = jnp.sqrt(jnp.maximum(d2, 1e-6))      # distances() clamps min=1e-6
        hinge = jnp.maximum(2.0 * margin - d, 0.0) ** 2
        mask = triu * active_c1 * active_1c
        npairs = jnp.sum(mask, keepdims=True)
        val = jnp.sum(hinge * mask, keepdims=True) / jnp.maximum(npairs, 1.0)
        return jnp.where(n_active >= 2.0, val, 0.0)

    ft_inter = inter(ft_cent, c2_ft, FT_INTER_MARGIN)
    sp_inter = inter(sp_cent, c2_sp, SP_INTER_MARGIN)

    # ---- regularization: mean ||ft_centroid||_2 over active clusters ----
    ft_reg = jnp.sum(jnp.sqrt(c2_ft) * active_c1, keepdims=True) * inv_nact

    # ---- gaussian kernel / covariance loss — dense (C, N) tiles ----
    # TODO(synk): point-cluster distances use the expanded x^2 + c^2 - 2xc form (f32);
    #             near-coincident points/centroids can lose a few ulps vs (x - mu)^2.
    inv_spcov2 = 1.0 / (sp_cov * sp_cov)                             # (1, N) divide once
    inv_ftcov2 = 1.0 / (ft_cov * ft_cov)
    x2_sp = jnp.sum(spT ** 2, axis=0, keepdims=True)                 # (1, N)
    x2_ft = jnp.sum(ftT ** 2, axis=0, keepdims=True)
    gram_sp = jnp.dot(sp_cent, spT, preferred_element_type=jnp.float32)   # (C, N)
    gram_ft = jnp.dot(ft_cent, ftT, preferred_element_type=jnp.float32)
    d2_sp = jnp.maximum(c2_sp + x2_sp - 2.0 * gram_sp, 0.0) * inv_spcov2
    d2_ft = jnp.maximum(c2_ft + x2_ft - 2.0 * gram_ft, 0.0) * inv_ftcov2
    pvec = jnp.exp(-(d2_sp + d2_ft))
    p = jnp.minimum(jnp.maximum(pvec, EPS), 1.0 - EPS)
    # BCEWithLogits(log(p/(1-p)), y) == -(y*log(p) + (1-y)*log(1-p)) for clamped p
    bce = -(oh * jnp.log(p) + (1.0 - oh) * jnp.log(1.0 - p))
    w = valid * active_c1                                            # (C, N)
    cov_loss = (jnp.sum(bce * w, keepdims=True)
                / jnp.maximum(jnp.sum(w, keepdims=True), 1.0))

    # accuracy: per-cluster IoU of (p > 0.5 == logits > 0) vs one-hot target
    pred = (p > 0.5) & (valid > 0.5)
    lbl = oh > 0.5
    inter_c = jnp.sum((pred & lbl).astype(jnp.float32), axis=1, keepdims=True)
    union_c = jnp.sum((pred | lbl).astype(jnp.float32), axis=1, keepdims=True)
    iou_c = (inter_c + 1e-6) / (union_c + 1e-6)
    acc = jnp.sum(iou_c * active_c1, keepdims=True) * inv_nact

    # ---- occupancy loss: | occ_p - log(count of p's cluster) |, scatter_mean ----
    log_cnt = jnp.log(safe_c1)                                       # (C, 1)
    occ_truth = jnp.sum(oh * log_cnt, axis=0, keepdims=True)         # (1, N)
    occ_err = jnp.abs(occ - occ_truth)                               # (1, N)
    occ_cmean = jnp.sum(oh * occ_err, axis=1, keepdims=True) * inv_cnt
    occ_loss = jnp.sum(occ_cmean * active_c1, keepdims=True) * inv_nact

    # ---- emit the 8 scalars on sublanes 0..7 of the per-group output tile ----
    vals = (ft_inter, ft_intra, ft_reg, sp_inter, sp_intra, cov_loss, occ_loss, acc)
    sub = lax.broadcasted_iota(jnp.int32, (C_MAX, OUT_W), 0)
    row = jnp.zeros((C_MAX, OUT_W), jnp.float32)
    for k, v in enumerate(vals):
        row = row + v * (sub == k).astype(jnp.float32)
    out_ref[0] = row


@jax.jit
def group_losses_pallas(packed):
    G = packed.shape[0]
    return pl.pallas_call(
        gs_group_kernel,
        out_shape=jax.ShapeDtypeStruct((G, C_MAX, OUT_W), jnp.float32),
        grid=(G,),
        in_specs=[pl.BlockSpec((1, RK, N_MAX), lambda g: (g, 0, 0))],
        out_specs=pl.BlockSpec((1, C_MAX, OUT_W), lambda g: (g, 0, 0)),
        compiler_params=pltpu.CompilerParams(
            dimension_semantics=("parallel",)),   # megacore sharding on v7x
    )(packed)


# ----------------------------- host-side glue -----------------------------------
def build_groups(sp_all, ft_all, cov_all, occ_all, slabels, clabels, batch_ids):
    """Mask per (batch, semantic class), drop group==-1, remap group labels to
    contiguous ids (unique_label_torch) and pack each group into one (RK, N_MAX)
    cluster-major slab.  A group contributes to the loss only if it has >= 2
    unique clusters (mirrors `groups_unique.shape[0] < 2 -> continue`)."""
    assert sp_all.shape[1] == D_SP and ft_all.shape[1] == D_FT
    occ_all = occ_all.reshape(occ_all.shape[0], -1)
    batches = np.unique(batch_ids)
    meta, packs = [], []
    for b in batches:
        bmask = batch_ids == b
        for sc in CLASSES:
            idx = bmask & (slabels == sc) & (clabels != -1)
            n = int(idx.sum())
            pk = np.zeros((RK, N_MAX), np.float32)
            include = False
            if n > 0:
                assert n <= N_MAX
                uniq, remap = np.unique(clabels[idx], return_inverse=True)
                assert remap.max() < C_MAX
                include = uniq.shape[0] >= 2      # skip groups with < 2 unique clusters
                pk[ROW_SP:ROW_SP + D_SP, :n] = sp_all[idx].T
                pk[ROW_FT:ROW_FT + D_FT, :n] = ft_all[idx].T
                pk[ROW_SPCOV, :n] = cov_all[idx, 0]
                pk[ROW_FTCOV, :n] = cov_all[idx, 1]
                pk[ROW_OCC, :n] = occ_all[idx, 0]
                pk[ROW_VALID, :n] = 1.0
                pk[ROW_OH + remap, np.arange(n)] = 1.0
            meta.append((int(b), sc, include))
            packs.append(pk)
    return meta, jnp.asarray(np.stack(packs, axis=0))


def graph_spice_embedding_loss_forward(out, segment_label, cluster_label):
    """Mirrors GraphSPICEEmbeddingLoss.forward (no 'segmentation' key in `out`)."""
    # TODO(synk): optional segmentation CE branch ('segmentation' in out) not included.
    num_gpus = len(segment_label)
    loss = defaultdict(list)
    accuracy = defaultdict(list)
    loss_keys = ['loss', 'ft_intra_loss', 'ft_inter_loss', 'ft_reg_loss',
                 'sp_intra_loss', 'sp_inter_loss', 'cov_loss', 'occ_loss']
    for i in range(num_gpus):
        seg = np.asarray(segment_label[i])
        clu = np.asarray(cluster_label[i])
        slabels = seg[:, -1].astype(np.int64)
        clabels = clu[:, -1].astype(np.int64)
        batch_idx = seg[:, 0]                        # batch_column = 0
        sp_all = np.asarray(out['spatial_embeddings'][i], np.float32)
        ft_all = np.asarray(out['feature_embeddings'][i], np.float32)
        cov_all = np.asarray(out['covariance'][i], np.float32)
        occ_all = np.asarray(out['occupancy'][i], np.float32)

        meta, packed = build_groups(
            sp_all, ft_all, cov_all, occ_all, slabels, clabels, batch_idx)
        per_group_dev = group_losses_pallas(packed)
        per_group = np.asarray(jax.block_until_ready(per_group_dev))   # (G, 8, 128)

        batches = np.unique(batch_idx)
        gidx = 0
        for _b in batches:
            loss_class = {k: [] for k in loss_keys}
            acc_class = {'accuracy': 0.0}
            for c in range(5):
                acc_class[f'accuracy_{c}'] = 0.0
            counts = 0
            for sc in CLASSES:
                _, _, include = meta[gidx]
                row = per_group[gidx, :, 0]
                gidx += 1
                if not include:
                    continue
                (ft_inter, ft_intra, ft_reg, sp_inter, sp_intra,
                 cov_l, occ_l, acc) = [float(row[k]) for k in range(8)]
                ft_loss = (FT_LOSS_W['inter'] * ft_inter + FT_LOSS_W['intra'] * ft_intra
                           + FT_LOSS_W['reg'] * ft_reg)
                sp_loss = SP_LOSS_W['inter'] * sp_inter + SP_LOSS_W['intra'] * sp_intra
                loss_class['ft_intra_loss'].append(ft_intra)
                loss_class['ft_inter_loss'].append(ft_inter)
                loss_class['ft_reg_loss'].append(ft_reg)
                loss_class['sp_intra_loss'].append(sp_intra)
                loss_class['sp_inter_loss'].append(sp_inter)
                loss_class['cov_loss'].append(cov_l)
                loss_class['occ_loss'].append(occ_l)
                loss_class['loss'].append(ft_loss + sp_loss + cov_l + occ_l)
                acc_class[f'accuracy_{sc}'] = acc
                acc_class['accuracy'] += acc
                counts += 1
            if counts > 0:
                acc_class['accuracy'] /= counts
                for c in range(5):
                    acc_class[f'accuracy_{c}'] /= counts
            for key, val in loss_class.items():
                loss[key].append(sum(val) / len(val) if len(val) else 0.0)
            for s, a in acc_class.items():
                accuracy[s].append(a)

    loss_avg = {}
    acc_avg = defaultdict(float)
    for key, val in loss.items():
        loss_avg[key] = sum(val) / len(val) if sum(val) > 0 else 0.0
    for key, val in accuracy.items():
        acc_avg[key] = sum(val) / len(val) if sum(val) > 0 else 1.0
    res = {}
    res.update(loss_avg)
    res.update(acc_avg)
    return res


# ----------------------------------- demo ---------------------------------------
if __name__ == "__main__":
    key = jax.random.PRNGKey(0)
    k = jax.random.split(key, 8)
    N_total = 256

    batch_idx = jax.random.randint(k[0], (N_total,), 0, 2)          # 2 batches
    slabels = jax.random.randint(k[1], (N_total,), 0, 5)            # semantic 0..4
    clabels = jax.random.randint(k[2], (N_total,), -1, 6)           # clusters -1..5
    sp_emb = 0.5 * jax.random.normal(k[3], (N_total, D_SP), jnp.float32)
    ft_emb = jax.random.normal(k[4], (N_total, D_FT), jnp.float32)
    covariance = jax.random.uniform(k[5], (N_total, 2), jnp.float32, 0.1, 1.0)
    occupancy = jax.random.normal(k[6], (N_total, 1), jnp.float32)
    coords = jax.random.uniform(k[7], (N_total, 3), jnp.float32)

    segment_label = [jnp.concatenate(
        [batch_idx[:, None].astype(jnp.float32), coords,
         slabels[:, None].astype(jnp.float32)], axis=1)]             # (N, 5)
    cluster_label = [jnp.concatenate(
        [batch_idx[:, None].astype(jnp.float32), coords,
         clabels[:, None].astype(jnp.float32)], axis=1)]             # (N, 5)

    net_out = {'spatial_embeddings': [sp_emb],
               'feature_embeddings': [ft_emb],
               'covariance': [covariance],
               'occupancy': [occupancy]}

    res = graph_spice_embedding_loss_forward(net_out, segment_label, cluster_label)
    jax.block_until_ready(jnp.asarray(res['loss']))
    print("KERNEL_OK")
</pallas_src>

<mosaic_0001>
module attributes {stable_mosaic.version = 11 : i64} {
  func.func @gs_group_kernel(%arg0: i32, %arg1: memref<1x40x128xf32, #tpu.memory_space<vmem>>, %arg2: memref<1x8x128xf32, #tpu.memory_space<vmem>>) attributes {dimension_semantics = [#tpu.dimension_semantics<parallel>], iteration_bounds = array<i64: 8>, scalar_prefetch = 0 : i64, scratch_operands = 0 : i64, tpu.core_type = #tpu.core_type<tc>, window_params = [{transform_indices = @transform_0, window_bounds = array<i64: 1, 40, 128>}, {transform_indices = @transform_1, window_bounds = array<i64: 1, 8, 128>}]} {
    %c0 = arith.constant 0 : index
    %c0_0 = arith.constant 0 : index
    %c0_1 = arith.constant 0 : index
    %0 = vector.load %arg1[%c0, %c0_0, %c0_1] : memref<1x40x128xf32, #tpu.memory_space<vmem>>, vector<1x40x128xf32>
    %1 = vector.shape_cast %0 : vector<1x40x128xf32> to vector<40x128xf32>
    %2 = vector.extract_strided_slice %1 {offsets = [32, 0], sizes = [8, 128], strides = [1, 1]} : vector<40x128xf32> to vector<8x128xf32>
    %3 = vector.extract_strided_slice %1 {offsets = [0, 0], sizes = [24, 128], strides = [1, 1]} : vector<40x128xf32> to vector<24x128xf32>
    %4 = vector.extract_strided_slice %1 {offsets = [0, 0], sizes = [8, 128], strides = [1, 1]} : vector<40x128xf32> to vector<8x128xf32>
    %5 = vector.extract_strided_slice %1 {offsets = [8, 0], sizes = [16, 128], strides = [1, 1]} : vector<40x128xf32> to vector<16x128xf32>
    %6 = vector.extract_strided_slice %1 {offsets = [24, 0], sizes = [1, 128], strides = [1, 1]} : vector<40x128xf32> to vector<1x128xf32>
    %cst = arith.constant 1.000000e-03 : f32
    %7 = vector.broadcast %cst : f32 to vector<1x128xf32>
    %8 = arith.maximumf %6, %7 : vector<1x128xf32>
    %9 = vector.extract_strided_slice %1 {offsets = [25, 0], sizes = [1, 128], strides = [1, 1]} : vector<40x128xf32> to vector<1x128xf32>
    %cst_2 = arith.constant 1.000000e-03 : f32
    %10 = vector.broadcast %cst_2 : f32 to vector<1x128xf32>
    %11 = arith.maximumf %9, %10 : vector<1x128xf32>
    %12 = vector.extract_strided_slice %1 {offsets = [26, 0], sizes = [1, 128], strides = [1, 1]} : vector<40x128xf32> to vector<1x128xf32>
    %13 = vector.extract_strided_slice %1 {offsets = [27, 0], sizes = [1, 128], strides = [1, 1]} : vector<40x128xf32> to vector<1x128xf32>
    %cst_3 = arith.constant dense<0.000000e+00> : vector<8xf32>
    %14 = vector.multi_reduction <add>, %2, %cst_3 [1] : vector<8x128xf32> to vector<8xf32>
    %15 = vector.shape_cast %14 : vector<8xf32> to vector<8x1xf32>
    %cst_4 = arith.constant 5.000000e-01 : f32
    %16 = vector.broadcast %cst_4 : f32 to vector<8x1xf32>
    %17 = arith.cmpf ogt, %15, %16 : vector<8x1xf32>
    %18 = arith.extui %17 : vector<8x1xi1> to vector<8x1xi32>
    %19 = arith.sitofp %18 : vector<8x1xi32> to vector<8x1xf32>
    %cst_5 = arith.constant 1.000000e+00 : f32
    %20 = vector.broadcast %cst_5 : f32 to vector<8x1xf32>
    %21 = arith.maximumf %15, %20 : vector<8x1xf32>
    %cst_6 = arith.constant 1.000000e+00 : f32
    %22 = vector.broadcast %cst_6 : f32 to vector<8x1xf32>
    %23 = arith.divf %22, %21 : vector<8x1xf32>
    %24 = vector.shape_cast %19 : vector<8x1xf32> to vector<1x8x1xf32>
    %cst_7 = arith.constant dense<0.000000e+00> : vector<1xf32>
    %25 = vector.multi_reduction <add>, %24, %cst_7 [1, 2] : vector<1x8x1xf32> to vector<1xf32>
    %26 = vector.shape_cast %25 : vector<1xf32> to vector<1x1x1xf32>
    %27 = vector.extract %26[0, 0, 0] : f32 from vector<1x1x1xf32>
    %28 = vector.broadcast %27 : f32 to vector<1x1xf32>
    %cst_8 = arith.constant 1.000000e+00 : f32
    %29 = vector.broadcast %cst_8 : f32 to vector<1x1xf32>
    %30 = arith.maximumf %28, %29 : vector<1x1xf32>
    %cst_9 = arith.constant 1.000000e+00 : f32
    %31 = vector.broadcast %cst_9 : f32 to vector<1x1xf32>
    %32 = arith.divf %31, %30 : vector<1x1xf32>
    %33 = tpu.iota {dimensions = array<i32: 0>} : vector<8x8xi32>
    %34 = tpu.iota {dimensions = array<i32: 1>} : vector<8x8xi32>
    %35 = arith.cmpi eq, %33, %34 : vector<8x8xi32>
    %36 = arith.extui %35 : vector<8x8xi1> to vector<8x8xi32>
    %37 = arith.sitofp %36 : vector<8x8xi32> to vector<8x8xf32>
    %38 = arith.cmpi sgt, %34, %33 : vector<8x8xi32>
    %39 = arith.extui %38 : vector<8x8xi1> to vector<8x8xi32>
    %40 = arith.sitofp %39 : vector<8x8xi32> to vector<8x8xf32>
    %41 = vector.broadcast %19 : vector<8x1xf32> to vector<8x8xf32>
    %42 = arith.mulf %37, %41 : vector<8x8xf32>
    %cst_10 = arith.constant dense<0.000000e+00> : vector<8xf32>
    %43 = vector.multi_reduction <add>, %42, %cst_10 [0] : vector<8x8xf32> to vector<8xf32>
    %44 = vector.shape_cast %43 : vector<8xf32> to vector<1x8xf32>
    %cst_11 = arith.constant dense<0.000000e+00> : vector<8x24xf32>
    %45 = tpu.matmul %2, %3, %cst_11 {dimension_numbers = #tpu.dot_dimension_numbers<[1], [1], [0], [0], [0, 0, 1, 0], [], []>} : vector<8x128xf32>, vector<24x128xf32>, vector<8x24xf32> -> vector<8x24xf32>
    %46 = vector.broadcast %23 : vector<8x1xf32> to vector<8x24xf32>
    %47 = arith.mulf %45, %46 : vector<8x24xf32>
    %48 = vector.extract_strided_slice %47 {offsets = [0, 0], sizes = [8, 8], strides = [1, 1]} : vector<8x24xf32> to vector<8x8xf32>
    %49 = vector.extract_strided_slice %47 {offsets = [0, 8], sizes = [8, 16], strides = [1, 1]} : vector<8x24xf32> to vector<8x16xf32>
    %cst_12 = arith.constant dense<0.000000e+00> : vector<24x128xf32>
    %50 = tpu.matmul %47, %2, %cst_12 {dimension_numbers = #tpu.dot_dimension_numbers<[0], [0], [1], [1], [0, 1, 1, 1], [], []>} : vector<8x24xf32>, vector<8x128xf32>, vector<24x128xf32> -> vector<24x128xf32>
    %51 = arith.subf %3, %50 : vector<24x128xf32>
    %cst_13 = arith.constant 9.99999993E-9 : f32
    %52 = vector.broadcast %cst_13 : f32 to vector<24x128xf32>
    %53 = arith.addf %51, %52 : vector<24x128xf32>
    %54 = vector.extract_strided_slice %53 {offsets = [0, 0], sizes = [8, 128], strides = [1, 1]} : vector<24x128xf32> to vector<8x128xf32>
    %55 = arith.mulf %54, %54 : vector<8x128xf32>
    %cst_14 = arith.constant dense<0.000000e+00> : vector<128xf32>
    %56 = vector.multi_reduction <add>, %55, %cst_14 [0] : vector<8x128xf32> to vector<128xf32>
    %57 = vector.shape_cast %56 : vector<128xf32> to vector<1x128xf32>
    %58 = math.sqrt %57 : vector<1x128xf32>
    %59 = vector.extract_strided_slice %53 {offsets = [8, 0], sizes = [16, 128], strides = [1, 1]} : vector<24x128xf32> to vector<16x128xf32>
    %60 = arith.mulf %59, %59 : vector<16x128xf32>
    %cst_15 = arith.constant dense<0.000000e+00> : vector<128xf32>
    %61 = vector.multi_reduction <add>, %60, %cst_15 [0] : vector<16x128xf32> to vector<128xf32>
    %62 = vector.shape_cast %61 : vector<128xf32> to vector<1x128xf32>
    %63 = math.sqrt %62 : vector<1x128xf32>
    %cst_16 = arith.constant 1.000000e+00 : f32
    %64 = vector.broadcast %cst_16 : f32 to vector<1x128xf32>
    %65 = arith.subf %63, %64 : vector<1x128xf32>
    %cst_17 = arith.constant 0.000000e+00 : f32
    %66 = vector.broadcast %cst_17 : f32 to vector<1x128xf32>
    %67 = arith.maximumf %65, %66 : vector<1x128xf32>
    %68 = arith.mulf %67, %67 : vector<1x128xf32>
    %69 = vector.broadcast %68 : vector<1x128xf32> to vector<8x128xf32>
    %70 = arith.mulf %2, %69 : vector<8x128xf32>
    %cst_18 = arith.constant dense<0.000000e+00> : vector<8xf32>
    %71 = vector.multi_reduction <add>, %70, %cst_18 [1] : vector<8x128xf32> to vector<8xf32>
    %72 = vector.shape_cast %71 : vector<8xf32> to vector<8x1xf32>
    %73 = arith.mulf %72, %23 : vector<8x1xf32>
    %74 = arith.mulf %73, %19 : vector<8x1xf32>
    %75 = vector.shape_cast %74 : vector<8x1xf32> to vector<1x8x1xf32>
    %cst_19 = arith.constant dense<0.000000e+00> : vector<1xf32>
    %76 = vector.multi_reduction <add>, %75, %cst_19 [1, 2] : vector<1x8x1xf32> to vector<1xf32>
    %77 = vector.shape_cast %76 : vector<1xf32> to vector<1x1x1xf32>
    %78 = vector.extract %77[0, 0, 0] : f32 from vector<1x1x1xf32>
    %79 = vector.broadcast %78 : f32 to vector<1x1xf32>
    %80 = arith.mulf %79, %32 : vector<1x1xf32>
    %cst_20 = arith.constant 0.000000e+00 : f32
    %81 = vector.broadcast %cst_20 : f32 to vector<1x128xf32>
    %82 = arith.subf %58, %81 : vector<1x128xf32>
    %cst_21 = arith.constant 0.000000e+00 : f32
    %83 = vector.broadcast %cst_21 : f32 to vector<1x128xf32>
    %84 = arith.maximumf %82, %83 : vector<1x128xf32>
    %85 = arith.mulf %84, %84 : vector<1x128xf32>
    %86 = vector.broadcast %85 : vector<1x128xf32> to vector<8x128xf32>
    %87 = arith.mulf %2, %86 : vector<8x128xf32>
    %cst_22 = arith.constant dense<0.000000e+00> : vector<8xf32>
    %88 = vector.multi_reduction <add>, %87, %cst_22 [1] : vector<8x128xf32> to vector<8xf32>
    %89 = vector.shape_cast %88 : vector<8xf32> to vector<8x1xf32>
    %90 = arith.mulf %89, %23 : vector<8x1xf32>
    %91 = arith.mulf %90, %19 : vector<8x1xf32>
    %92 = vector.shape_cast %91 : vector<8x1xf32> to vector<1x8x1xf32>
    %cst_23 = arith.constant dense<0.000000e+00> : vector<1xf32>
    %93 = vector.multi_reduction <add>, %92, %cst_23 [1, 2] : vector<1x8x1xf32> to vector<1xf32>
    %94 = vector.shape_cast %93 : vector<1xf32> to vector<1x1x1xf32>
    %95 = vector.extract %94[0, 0, 0] : f32 from vector<1x1x1xf32>
    %96 = vector.broadcast %95 : f32 to vector<1x1xf32>
    %97 = arith.mulf %96, %32 : vector<1x1xf32>
    %98 = arith.mulf %48, %48 : vector<8x8xf32>
    %cst_24 = arith.constant dense<0.000000e+00> : vector<8xf32>
    %99 = vector.multi_reduction <add>, %98, %cst_24 [1] : vector<8x8xf32> to vector<8xf32>
    %100 = vector.shape_cast %99 : vector<8xf32> to vector<8x1xf32>
    %101 = arith.mulf %49, %49 : vector<8x16xf32>
    %cst_25 = arith.constant dense<0.000000e+00> : vector<8xf32>
    %102 = vector.multi_reduction <add>, %101, %cst_25 [1] : vector<8x16xf32> to vector<8xf32>
    %103 = vector.shape_cast %102 : vector<8xf32> to vector<8x1xf32>
    %cst_26 = arith.constant dense<0.000000e+00> : vector<8x8xf32>
    %104 = tpu.matmul %49, %49, %cst_26 {dimension_numbers = #tpu.dot_dimension_numbers<[1], [1], [0], [0], [0, 0, 1, 0], [], []>} : vector<8x16xf32>, vector<8x16xf32>, vector<8x8xf32> -> vector<8x8xf32>
    %105 = arith.mulf %104, %37 : vector<8x8xf32>
    %cst_27 = arith.constant dense<0.000000e+00> : vector<8xf32>
    %106 = vector.multi_reduction <add>, %105, %cst_27 [0] : vector<8x8xf32> to vector<8xf32>
    %107 = vector.shape_cast %106 : vector<8xf32> to vector<1x8xf32>
    %108 = vector.broadcast %103 : vector<8x1xf32> to vector<8x8xf32>
    %109 = vector.broadcast %107 : vector<1x8xf32> to vector<8x8xf32>
    %110 = arith.addf %108, %109 : vector<8x8xf32>
    %cst_28 = arith.constant 2.000000e+00 : f32
    %111 = vector.broadcast %cst_28 : f32 to vector<8x8xf32>
    %112 = arith.mulf %111, %104 : vector<8x8xf32>
    %113 = arith.subf %110, %112 : vector<8x8xf32>
    %cst_29 = arith.constant 9.99999997E-7 : f32
    %114 = vector.broadcast %cst_29 : f32 to vector<8x8xf32>
    %115 = arith.maximumf %113, %114 : vector<8x8xf32>
    %116 = math.sqrt %115 : vector<8x8xf32>
    %cst_30 = arith.constant 3.000000e+00 : f32
    %117 = vector.broadcast %cst_30 : f32 to vector<8x8xf32>
    %118 = arith.subf %117, %116 : vector<8x8xf32>
    %cst_31 = arith.constant 0.000000e+00 : f32
    %119 = vector.broadcast %cst_31 : f32 to vector<8x8xf32>
    %120 = arith.maximumf %118, %119 : vector<8x8xf32>
    %121 = arith.mulf %120, %120 : vector<8x8xf32>
    %122 = vector.broadcast %19 : vector<8x1xf32> to vector<8x8xf32>
    %123 = arith.mulf %40, %122 : vector<8x8xf32>
    %124 = vector.broadcast %44 : vector<1x8xf32> to vector<8x8xf32>
    %125 = arith.mulf %123, %124 : vector<8x8xf32>
    %126 = vector.shape_cast %125 : vector<8x8xf32> to vector<1x8x8xf32>
    %cst_32 = arith.constant dense<0.000000e+00> : vector<1xf32>
    %127 = vector.multi_reduction <add>, %126, %cst_32 [1, 2] : vector<1x8x8xf32> to vector<1xf32>
    %128 = vector.shape_cast %127 : vector<1xf32> to vector<1x1x1xf32>
    %129 = vector.extract %128[0, 0, 0] : f32 from vector<1x1x1xf32>
    %130 = vector.broadcast %129 : f32 to vector<1x1xf32>
    %131 = arith.mulf %121, %125 : vector<8x8xf32>
    %132 = vector.shape_cast %131 : vector<8x8xf32> to vector<1x8x8xf32>
    %cst_33 = arith.constant dense<0.000000e+00> : vector<1xf32>
    %133 = vector.multi_reduction <add>, %132, %cst_33 [1, 2] : vector<1x8x8xf32> to vector<1xf32>
    %134 = vector.shape_cast %133 : vector<1xf32> to vector<1x1x1xf32>
    %135 = vector.extract %134[0, 0, 0] : f32 from vector<1x1x1xf32>
    %136 = vector.broadcast %135 : f32 to vector<1x1xf32>
    %cst_34 = arith.constant 1.000000e+00 : f32
    %137 = vector.broadcast %cst_34 : f32 to vector<1x1xf32>
    %138 = arith.maximumf %130, %137 : vector<1x1xf32>
    %139 = arith.divf %136, %138 : vector<1x1xf32>
    %cst_35 = arith.constant 2.000000e+00 : f32
    %140 = vector.broadcast %cst_35 : f32 to vector<1x1xf32>
    %141 = arith.cmpf oge, %28, %140 : vector<1x1xf32>
    %cst_36 = arith.constant 0.000000e+00 : f32
    %142 = vector.broadcast %cst_36 : f32 to vector<1x1xf32>
    %143 = arith.select %141, %139, %142 : vector<1x1xi1>, vector<1x1xf32>
    %cst_37 = arith.constant dense<0.000000e+00> : vector<8x8xf32>
    %144 = tpu.matmul %48, %48, %cst_37 {dimension_numbers = #tpu.dot_dimension_numbers<[1], [1], [0], [0], [0, 0, 1, 0], [], []>} : vector<8x8xf32>, vector<8x8xf32>, vector<8x8xf32> -> vector<8x8xf32>
    %145 = arith.mulf %144, %37 : vector<8x8xf32>
    %cst_38 = arith.constant dense<0.000000e+00> : vector<8xf32>
    %146 = vector.multi_reduction <add>, %145, %cst_38 [0] : vector<8x8xf32> to vector<8xf32>
    %147 = vector.shape_cast %146 : vector<8xf32> to vector<1x8xf32>
    %148 = vector.broadcast %100 : vector<8x1xf32> to vector<8x8xf32>
    %149 = vector.broadcast %147 : vector<1x8xf32> to vector<8x8xf32>
    %150 = arith.addf %148, %149 : vector<8x8xf32>
    %cst_39 = arith.constant 2.000000e+00 : f32
    %151 = vector.broadcast %cst_39 : f32 to vector<8x8xf32>
    %152 = arith.mulf %151, %144 : vector<8x8xf32>
    %153 = arith.subf %150, %152 : vector<8x8xf32>
    %cst_40 = arith.constant 9.99999997E-7 : f32
    %154 = vector.broadcast %cst_40 : f32 to vector<8x8xf32>
    %155 = arith.maximumf %153, %154 : vector<8x8xf32>
    %156 = math.sqrt %155 : vector<8x8xf32>
    %cst_41 = arith.constant 4.000000e-01 : f32
    %157 = vector.broadcast %cst_41 : f32 to vector<8x8xf32>
    %158 = arith.subf %157, %156 : vector<8x8xf32>
    %cst_42 = arith.constant 0.000000e+00 : f32
    %159 = vector.broadcast %cst_42 : f32 to vector<8x8xf32>
    %160 = arith.maximumf %158, %159 : vector<8x8xf32>
    %161 = arith.mulf %160, %160 : vector<8x8xf32>
    %162 = vector.broadcast %19 : vector<8x1xf32> to vector<8x8xf32>
    %163 = arith.mulf %40, %162 : vector<8x8xf32>
    %164 = vector.broadcast %44 : vector<1x8xf32> to vector<8x8xf32>
    %165 = arith.mulf %163, %164 : vector<8x8xf32>
    %166 = vector.shape_cast %165 : vector<8x8xf32> to vector<1x8x8xf32>
    %cst_43 = arith.constant dense<0.000000e+00> : vector<1xf32>
    %167 = vector.multi_reduction <add>, %166, %cst_43 [1, 2] : vector<1x8x8xf32> to vector<1xf32>
    %168 = vector.shape_cast %167 : vector<1xf32> to vector<1x1x1xf32>
    %169 = vector.extract %168[0, 0, 0] : f32 from vector<1x1x1xf32>
    %170 = vector.broadcast %169 : f32 to vector<1x1xf32>
    %171 = arith.mulf %161, %165 : vector<8x8xf32>
    %172 = vector.shape_cast %171 : vector<8x8xf32> to vector<1x8x8xf32>
    %cst_44 = arith.constant dense<0.000000e+00> : vector<1xf32>
    %173 = vector.multi_reduction <add>, %172, %cst_44 [1, 2] : vector<1x8x8xf32> to vector<1xf32>
    %174 = vector.shape_cast %173 : vector<1xf32> to vector<1x1x1xf32>
    %175 = vector.extract %174[0, 0, 0] : f32 from vector<1x1x1xf32>
    %176 = vector.broadcast %175 : f32 to vector<1x1xf32>
    %cst_45 = arith.constant 1.000000e+00 : f32
    %177 = vector.broadcast %cst_45 : f32 to vector<1x1xf32>
    %178 = arith.maximumf %170, %177 : vector<1x1xf32>
    %179 = arith.divf %176, %178 : vector<1x1xf32>
    %cst_46 = arith.constant 2.000000e+00 : f32
    %180 = vector.broadcast %cst_46 : f32 to vector<1x1xf32>
    %181 = arith.cmpf oge, %28, %180 : vector<1x1xf32>
    %cst_47 = arith.constant 0.000000e+00 : f32
    %182 = vector.broadcast %cst_47 : f32 to vector<1x1xf32>
    %183 = arith.select %181, %179, %182 : vector<1x1xi1>, vector<1x1xf32>
    %184 = math.sqrt %103 : vector<8x1xf32>
    %185 = arith.mulf %184, %19 : vector<8x1xf32>
    %186 = vector.shape_cast %185 : vector<8x1xf32> to vector<1x8x1xf32>
    %cst_48 = arith.constant dense<0.000000e+00> : vector<1xf32>
    %187 = vector.multi_reduction <add>, %186, %cst_48 [1, 2] : vector<1x8x1xf32> to vector<1xf32>
    %188 = vector.shape_cast %187 : vector<1xf32> to vector<1x1x1xf32>
    %189 = vector.extract %188[0, 0, 0] : f32 from vector<1x1x1xf32>
    %190 = vector.broadcast %189 : f32 to vector<1x1xf32>
    %191 = arith.mulf %190, %32 : vector<1x1xf32>
    %192 = arith.mulf %8, %8 : vector<1x128xf32>
    %cst_49 = arith.constant 1.000000e+00 : f32
    %193 = vector.broadcast %cst_49 : f32 to vector<1x128xf32>
    %194 = arith.divf %193, %192 : vector<1x128xf32>
    %195 = arith.mulf %11, %11 : vector<1x128xf32>
    %cst_50 = arith.constant 1.000000e+00 : f32
    %196 = vector.broadcast %cst_50 : f32 to vector<1x128xf32>
    %197 = arith.divf %196, %195 : vector<1x128xf32>
    %198 = arith.mulf %4, %4 : vector<8x128xf32>
    %cst_51 = arith.constant dense<0.000000e+00> : vector<128xf32>
    %199 = vector.multi_reduction <add>, %198, %cst_51 [0] : vector<8x128xf32> to vector<128xf32>
    %200 = vector.shape_cast %199 : vector<128xf32> to vector<1x128xf32>
    %201 = arith.mulf %5, %5 : vector<16x128xf32>
    %cst_52 = arith.constant dense<0.000000e+00> : vector<128xf32>
    %202 = vector.multi_reduction <add>, %201, %cst_52 [0] : vector<16x128xf32> to vector<128xf32>
    %203 = vector.shape_cast %202 : vector<128xf32> to vector<1x128xf32>
    %cst_53 = arith.constant dense<0.000000e+00> : vector<8x128xf32>
    %204 = tpu.matmul %48, %4, %cst_53 {dimension_numbers = #tpu.dot_dimension_numbers<[1], [0], [0], [1], [0, 0, 1, 1], [], []>} : vector<8x8xf32>, vector<8x128xf32>, vector<8x128xf32> -> vector<8x128xf32>
    %cst_54 = arith.constant dense<0.000000e+00> : vector<8x128xf32>
    %205 = tpu.matmul %49, %5, %cst_54 {dimension_numbers = #tpu.dot_dimension_numbers<[1], [0], [0], [1], [0, 0, 1, 1], [], []>} : vector<8x16xf32>, vector<16x128xf32>, vector<8x128xf32> -> vector<8x128xf32>
    %206 = vector.broadcast %100 : vector<8x1xf32> to vector<8x128xf32>
    %207 = vector.broadcast %200 : vector<1x128xf32> to vector<8x128xf32>
    %208 = arith.addf %206, %207 : vector<8x128xf32>
    %cst_55 = arith.constant 2.000000e+00 : f32
    %209 = vector.broadcast %cst_55 : f32 to vector<8x128xf32>
    %210 = arith.mulf %209, %204 : vector<8x128xf32>
    %211 = arith.subf %208, %210 : vector<8x128xf32>
    %cst_56 = arith.constant 0.000000e+00 : f32
    %212 = vector.broadcast %cst_56 : f32 to vector<8x128xf32>
    %213 = arith.maximumf %211, %212 : vector<8x128xf32>
    %214 = vector.broadcast %194 : vector<1x128xf32> to vector<8x128xf32>
    %215 = arith.mulf %213, %214 : vector<8x128xf32>
    %216 = vector.broadcast %103 : vector<8x1xf32> to vector<8x128xf32>
    %217 = vector.broadcast %203 : vector<1x128xf32> to vector<8x128xf32>
    %218 = arith.addf %216, %217 : vector<8x128xf32>
    %cst_57 = arith.constant 2.000000e+00 : f32
    %219 = vector.broadcast %cst_57 : f32 to vector<8x128xf32>
    %220 = arith.mulf %219, %205 : vector<8x128xf32>
    %221 = arith.subf %218, %220 : vector<8x128xf32>
    %cst_58 = arith.constant 0.000000e+00 : f32
    %222 = vector.broadcast %cst_58 : f32 to vector<8x128xf32>
    %223 = arith.maximumf %221, %222 : vector<8x128xf32>
    %224 = vector.broadcast %197 : vector<1x128xf32> to vector<8x128xf32>
    %225 = arith.mulf %223, %224 : vector<8x128xf32>
    %226 = arith.addf %215, %225 : vector<8x128xf32>
    %cst_59 = arith.constant 0.000000e+00 : f32
    %227 = vector.broadcast %cst_59 : f32 to vector<8x128xf32>
    %228 = arith.subf %227, %226 : vector<8x128xf32>
    %229 = math.exp %228 : vector<8x128xf32>
    %cst_60 = arith.constant 1.000000e-03 : f32
    %230 = vector.broadcast %cst_60 : f32 to vector<8x128xf32>
    %231 = arith.maximumf %229, %230 : vector<8x128xf32>
    %cst_61 = arith.constant 9.990000e-01 : f32
    %232 = vector.broadcast %cst_61 : f32 to vector<8x128xf32>
    %233 = arith.minimumf %231, %232 : vector<8x128xf32>
    %234 = math.log %233 : vector<8x128xf32>
    %235 = arith.mulf %2, %234 : vector<8x128xf32>
    %cst_62 = arith.constant 1.000000e+00 : f32
    %236 = vector.broadcast %cst_62 : f32 to vector<8x128xf32>
    %237 = arith.subf %236, %2 : vector<8x128xf32>
    %cst_63 = arith.constant 1.000000e+00 : f32
    %238 = vector.broadcast %cst_63 : f32 to vector<8x128xf32>
    %239 = arith.subf %238, %233 : vector<8x128xf32>
    %240 = math.log %239 : vector<8x128xf32>
    %241 = arith.mulf %237, %240 : vector<8x128xf32>
    %242 = arith.addf %235, %241 : vector<8x128xf32>
    %cst_64 = arith.constant 0.000000e+00 : f32
    %243 = vector.broadcast %cst_64 : f32 to vector<8x128xf32>
    %244 = arith.subf %243, %242 : vector<8x128xf32>
    %245 = vector.broadcast %13 : vector<1x128xf32> to vector<8x128xf32>
    %246 = vector.broadcast %19 : vector<8x1xf32> to vector<8x128xf32>
    %247 = arith.mulf %245, %246 : vector<8x128xf32>
    %248 = arith.mulf %244, %247 : vector<8x128xf32>
    %249 = vector.shape_cast %248 : vector<8x128xf32> to vector<1x8x128xf32>
    %cst_65 = arith.constant dense<0.000000e+00> : vector<1xf32>
    %250 = vector.multi_reduction <add>, %249, %cst_65 [1, 2] : vector<1x8x128xf32> to vector<1xf32>
    %251 = vector.shape_cast %250 : vector<1xf32> to vector<1x1x1xf32>
    %252 = vector.extract %251[0, 0, 0] : f32 from vector<1x1x1xf32>
    %253 = vector.broadcast %252 : f32 to vector<1x1xf32>
    %254 = vector.shape_cast %247 : vector<8x128xf32> to vector<1x8x128xf32>
    %cst_66 = arith.constant dense<0.000000e+00> : vector<1xf32>
    %255 = vector.multi_reduction <add>, %254, %cst_66 [1, 2] : vector<1x8x128xf32> to vector<1xf32>
    %256 = vector.shape_cast %255 : vector<1xf32> to vector<1x1x1xf32>
    %257 = vector.extract %256[0, 0, 0] : f32 from vector<1x1x1xf32>
    %258 = vector.broadcast %257 : f32 to vector<1x1xf32>
    %cst_67 = arith.constant 1.000000e+00 : f32
    %259 = vector.broadcast %cst_67 : f32 to vector<1x1xf32>
    %260 = arith.maximumf %258, %259 : vector<1x1xf32>
    %261 = arith.divf %253, %260 : vector<1x1xf32>
    %cst_68 = arith.constant 5.000000e-01 : f32
    %262 = vector.broadcast %cst_68 : f32 to vector<8x128xf32>
    %263 = arith.cmpf ogt, %233, %262 : vector<8x128xf32>
    %cst_69 = arith.constant 5.000000e-01 : f32
    %264 = vector.broadcast %cst_69 : f32 to vector<1x128xf32>
    %265 = arith.cmpf ogt, %13, %264 : vector<1x128xf32>
    %266 = vector.broadcast %265 : vector<1x128xi1> to vector<8x128xi1>
    %267 = arith.andi %263, %266 : vector<8x128xi1>
    %cst_70 = arith.constant 5.000000e-01 : f32
    %268 = vector.broadcast %cst_70 : f32 to vector<8x128xf32>
    %269 = arith.cmpf ogt, %2, %268 : vector<8x128xf32>
    %270 = arith.andi %267, %269 : vector<8x128xi1>
    %271 = arith.extui %270 : vector<8x128xi1> to vector<8x128xi32>
    %272 = arith.sitofp %271 : vector<8x128xi32> to vector<8x128xf32>
    %cst_71 = arith.constant dense<0.000000e+00> : vector<8xf32>
    %273 = vector.multi_reduction <add>, %272, %cst_71 [1] : vector<8x128xf32> to vector<8xf32>
    %274 = vector.shape_cast %273 : vector<8xf32> to vector<8x1xf32>
    %275 = arith.ori %267, %269 : vector<8x128xi1>
    %276 = arith.extui %275 : vector<8x128xi1> to vector<8x128xi32>
    %277 = arith.sitofp %276 : vector<8x128xi32> to vector<8x128xf32>
    %cst_72 = arith.constant dense<0.000000e+00> : vector<8xf32>
    %278 = vector.multi_reduction <add>, %277, %cst_72 [1] : vector<8x128xf32> to vector<8xf32>
    %279 = vector.shape_cast %278 : vector<8xf32> to vector<8x1xf32>
    %cst_73 = arith.constant 9.99999997E-7 : f32
    %280 = vector.broadcast %cst_73 : f32 to vector<8x1xf32>
    %281 = arith.addf %274, %280 : vector<8x1xf32>
    %cst_74 = arith.constant 9.99999997E-7 : f32
    %282 = vector.broadcast %cst_74 : f32 to vector<8x1xf32>
    %283 = arith.addf %279, %282 : vector<8x1xf32>
    %284 = arith.divf %281, %283 : vector<8x1xf32>
    %285 = arith.mulf %284, %19 : vector<8x1xf32>
    %286 = vector.shape_cast %285 : vector<8x1xf32> to vector<1x8x1xf32>
    %cst_75 = arith.constant dense<0.000000e+00> : vector<1xf32>
    %287 = vector.multi_reduction <add>, %286, %cst_75 [1, 2] : vector<1x8x1xf32> to vector<1xf32>
    %288 = vector.shape_cast %287 : vector<1xf32> to vector<1x1x1xf32>
    %289 = vector.extract %288[0, 0, 0] : f32 from vector<1x1x1xf32>
    %290 = vector.broadcast %289 : f32 to vector<1x1xf32>
    %291 = arith.mulf %290, %32 : vector<1x1xf32>
    %292 = math.log %21 : vector<8x1xf32>
    %293 = vector.broadcast %292 : vector<8x1xf32> to vector<8x128xf32>
    %294 = arith.mulf %2, %293 : vector<8x128xf32>
    %cst_76 = arith.constant dense<0.000000e+00> : vector<128xf32>
    %295 = vector.multi_reduction <add>, %294, %cst_76 [0] : vector<8x128xf32> to vector<128xf32>
    %296 = vector.shape_cast %295 : vector<128xf32> to vector<1x128xf32>
    %297 = arith.subf %12, %296 : vector<1x128xf32>
    %298 = math.absf %297 : vector<1x128xf32>
    %299 = vector.broadcast %298 : vector<1x128xf32> to vector<8x128xf32>
    %300 = arith.mulf %2, %299 : vector<8x128xf32>
    %cst_77 = arith.constant dense<0.000000e+00> : vector<8xf32>
    %301 = vector.multi_reduction <add>, %300, %cst_77 [1] : vector<8x128xf32> to vector<8xf32>
    %302 = vector.shape_cast %301 : vector<8xf32> to vector<8x1xf32>
    %303 = arith.mulf %302, %23 : vector<8x1xf32>
    %304 = arith.mulf %303, %19 : vector<8x1xf32>
    %305 = vector.shape_cast %304 : vector<8x1xf32> to vector<1x8x1xf32>
    %cst_78 = arith.constant dense<0.000000e+00> : vector<1xf32>
    %306 = vector.multi_reduction <add>, %305, %cst_78 [1, 2] : vector<1x8x1xf32> to vector<1xf32>
    %307 = vector.shape_cast %306 : vector<1xf32> to vector<1x1x1xf32>
    %308 = vector.extract %307[0, 0, 0] : f32 from vector<1x1x1xf32>
    %309 = vector.broadcast %308 : f32 to vector<1x1xf32>
    %310 = arith.mulf %309, %32 : vector<1x1xf32>
    %311 = tpu.iota {dimensions = array<i32: 0>} : vector<8x128xi32>
    %cst_79 = arith.constant 0.000000e+00 : f32
    %312 = vector.broadcast %cst_79 : f32 to vector<8x128xf32>
    %c0_i32 = arith.constant 0 : i32
    %313 = vector.broadcast %c0_i32 : i32 to vector<8x128xi32>
    %314 = arith.cmpi eq, %311, %313 : vector<8x128xi32>
    %315 = arith.extui %314 : vector<8x128xi1> to vector<8x128xi32>
    %316 = arith.sitofp %315 : vector<8x128xi32> to vector<8x128xf32>
    %317 = vector.broadcast %143 : vector<1x1xf32> to vector<8x128xf32>
    %318 = arith.mulf %317, %316 : vector<8x128xf32>
    %319 = arith.addf %312, %318 : vector<8x128xf32>
    %c1_i32 = arith.constant 1 : i32
    %320 = vector.broadcast %c1_i32 : i32 to vector<8x128xi32>
    %321 = arith.cmpi eq, %311, %320 : vector<8x128xi32>
    %322 = arith.extui %321 : vector<8x128xi1> to vector<8x128xi32>
    %323 = arith.sitofp %322 : vector<8x128xi32> to vector<8x128xf32>
    %324 = vector.broadcast %80 : vector<1x1xf32> to vector<8x128xf32>
    %325 = arith.mulf %324, %323 : vector<8x128xf32>
    %326 = arith.addf %319, %325 : vector<8x128xf32>
    %c2_i32 = arith.constant 2 : i32
    %327 = vector.broadcast %c2_i32 : i32 to vector<8x128xi32>
    %328 = arith.cmpi eq, %311, %327 : vector<8x128xi32>
    %329 = arith.extui %328 : vector<8x128xi1> to vector<8x128xi32>
    %330 = arith.sitofp %329 : vector<8x128xi32> to vector<8x128xf32>
    %331 = vector.broadcast %191 : vector<1x1xf32> to vector<8x128xf32>
    %332 = arith.mulf %331, %330 : vector<8x128xf32>
    %333 = arith.addf %326, %332 : vector<8x128xf32>
    %c3_i32 = arith.constant 3 : i32
    %334 = vector.broadcast %c3_i32 : i32 to vector<8x128xi32>
    %335 = arith.cmpi eq, %311, %334 : vector<8x128xi32>
    %336 = arith.extui %335 : vector<8x128xi1> to vector<8x128xi32>
    %337 = arith.sitofp %336 : vector<8x128xi32> to vector<8x128xf32>
    %338 = vector.broadcast %183 : vector<1x1xf32> to vector<8x128xf32>
    %339 = arith.mulf %338, %337 : vector<8x128xf32>
    %340 = arith.addf %333, %339 : vector<8x128xf32>
    %c4_i32 = arith.constant 4 : i32
    %341 = vector.broadcast %c4_i32 : i32 to vector<8x128xi32>
    %342 = arith.cmpi eq, %311, %341 : vector<8x128xi32>
    %343 = arith.extui %342 : vector<8x128xi1> to vector<8x128xi32>
    %344 = arith.sitofp %343 : vector<8x128xi32> to vector<8x128xf32>
    %345 = vector.broadcast %97 : vector<1x1xf32> to vector<8x128xf32>
    %346 = arith.mulf %345, %344 : vector<8x128xf32>
    %347 = arith.addf %340, %346 : vector<8x128xf32>
    %c5_i32 = arith.constant 5 : i32
    %348 = vector.broadcast %c5_i32 : i32 to vector<8x128xi32>
    %349 = arith.cmpi eq, %311, %348 : vector<8x128xi32>
    %350 = arith.extui %349 : vector<8x128xi1> to vector<8x128xi32>
    %351 = arith.sitofp %350 : vector<8x128xi32> to vector<8x128xf32>
    %352 = vector.broadcast %261 : vector<1x1xf32> to vector<8x128xf32>
    %353 = arith.mulf %352, %351 : vector<8x128xf32>
    %354 = arith.addf %347, %353 : vector<8x128xf32>
    %c6_i32 = arith.constant 6 : i32
    %355 = vector.broadcast %c6_i32 : i32 to vector<8x128xi32>
    %356 = arith.cmpi eq, %311, %355 : vector<8x128xi32>
    %357 = arith.extui %356 : vector<8x128xi1> to vector<8x128xi32>
    %358 = arith.sitofp %357 : vector<8x128xi32> to vector<8x128xf32>
    %359 = vector.broadcast %310 : vector<1x1xf32> to vector<8x128xf32>
    %360 = arith.mulf %359, %358 : vector<8x128xf32>
    %361 = arith.addf %354, %360 : vector<8x128xf32>
    %c7_i32 = arith.constant 7 : i32
    %362 = vector.broadcast %c7_i32 : i32 to vector<8x128xi32>
    %363 = arith.cmpi eq, %311, %362 : vector<8x128xi32>
    %364 = arith.extui %363 : vector<8x128xi1> to vector<8x128xi32>
    %365 = arith.sitofp %364 : vector<8x128xi32> to vector<8x128xf32>
    %366 = vector.broadcast %291 : vector<1x1xf32> to vector<8x128xf32>
    %367 = arith.mulf %366, %365 : vector<8x128xf32>
    %368 = arith.addf %361, %367 : vector<8x128xf32>
    %c0_80 = arith.constant 0 : index
    %c0_81 = arith.constant 0 : index
    %c0_82 = arith.constant 0 : index
    %369 = vector.load %arg2[%c0_80, %c0_81, %c0_82] : memref<1x8x128xf32, #tpu.memory_space<vmem>>, vector<1x8x128xf32>
    %370 = vector.shape_cast %369 : vector<1x8x128xf32> to vector<8x128xf32>
    %371 = vector.shape_cast %368 : vector<8x128xf32> to vector<1x8x128xf32>
    tpu.vector_store %arg2[%c0_80, %c0_81, %c0_82], %371 {strides = array<i32>} : memref<1x8x128xf32, #tpu.memory_space<vmem>>, vector<1x8x128xf32>,
    return
  }
  func.func @transform_0(%arg0: i32) -> (i32, i32, i32) {
    %c0_i32 = arith.constant 0 : i32
    %c0_i32_0 = arith.constant 0 : i32
    %c0_i32_1 = arith.constant 0 : i32
    return %arg0, %c0_i32, %c0_i32_0 : i32, i32, i32
  }
  func.func @transform_1(%arg0: i32) -> (i32, i32, i32) {
    %c0_i32 = arith.constant 0 : i32
    %c0_i32_0 = arith.constant 0 : i32
    %c0_i32_1 = arith.constant 0 : i32
    return %arg0, %c0_i32, %c0_i32_0 : i32, i32, i32
  }
}

</mosaic_0001>

<bundles_post_ra>
// kernel: group_losses_pallas.1
= control target key start
LH: loop header
LB: loop body
LE: loop exit
PB: predicated region body
PF: predicated region fallthrough
CT: control target
= control target key end

     0   :  { %6 = vsyncpa [#allocation3], 0  ;;  %s1519_s0 = inlined_call_operand.hbm [shape: f32[8,40,128], index: 0, kind: input, shape index: {}]   ;;  %s1520_s1 = inlined_call_operand.hbm [shape: f32[8,8,128], index: 1, kind: output, shape index: {}]  }
   0x1   :  { %8 = vsyncpa [#allocation3 + $0x1], 0 }
   0x2   :  { %9 = vsyncpa [#allocation4], 0 }
   0x3   :  { %11 = vsyncpa [#allocation4 + $0x1], 0  ;;  %s1173_s6 = smov 0   ;;  %s1175_s7 = smov 0  }
   0x4   :  { %s1177_s8 = smov 0   ;;  %s1179_s9 = smov 0  }
   0x5 LB: > { %s1194_s10 = sadd.s32 4294967295, %s1156_s9   ;;  %s921_s11 = sadd.s32 4294967294, %s1156_s9   ;;  %s1156_s9 = sphi %s1179_s9, %s1534_s9   ;;  %s1152_s8 = sphi %s1177_s8, %s1533_s8   ;;  %s1148_s7 = sphi %s1175_s7, %s1532_s7   ;;  %s1144_s6 = sphi %s1173_s6, %s1531_s6  }
   0x6   : > { %s1198_s12 = sadd.s32 1, %s1156_s9   ;;  %s24_s13 = sadd.s32 1, %s1152_s8 }
   0x7   : > { %s21_s14 = ssub.s32 %s1156_s9, %s1198_s12  ;;  %p31_p0 = scmp.ne.s32.totalorder %s1152_s8, %s1148_s7 }
   0x8   : > { %p22_p1 = scmp.eq.s32.totalorder %s21_s14, 0  ;;  %p32_p2 = scmp.eq.s32.totalorder %s1156_s9, 0 }
   0x9   : > { %p37_p3 = scmp.ne.s32.totalorder %s1148_s7, %s1144_s6  ;;  %p38_p4 = scmp.eq.s32.totalorder %s1194_s10, 0 }
   0xa   : > { %s1210_s15 = scalar_select %p22_p1, %s1152_s8, %s24_s13  }
   0xb   : > { %p33_p5 = por %p32_p2, %p31_p0  ;;  %p1212_p6 = por %p38_p4, %p37_p3 }
   0xc   : > { %p61_p7 = scmp.eq.s32.totalorder %s1194_s10, 7  ;;  %p67_p8 = scmp.eq.s32.totalorder %s921_s11, 7 }
   0xd   : > { %p991_p9 = scmp.lt.s32.totalorder %s1156_s9, 8  ;;  %s87_s19 = sand.u32 1, %s1152_s8  }
   0xe   : > { %p1218_p10 = por %p61_p7, %p31_p0  ;;  %p1222_p11 = por %p67_p8, %p37_p3 }
   0xf   : > { %s955_s20 = smul.u32 40, %s1156_s9  ;;  %p1231_p12 = pnand %p991_p9, %p33_p5 }
  0x10   : > { %s954_s21 = smul.u32 40, %s87_s19  ;;  %s88_s29 = scalar_lea.sflag [#allocation3], %s87_s19 }
  0x11   : > { %s96_s24 = scalar_lea.hbm %s1519_s0, %s955_s20  ;;  %p1064_p0 = pneg %p1231_p12 }
  0x12   : > { %s97_s26 = sshll.u32 %s96_s24, 4  ;;  %s91_s27 = scalar_lea.vmem [#allocation2], %s954_s21  ;;  %s98_s26 = int_to_ptr.hbm [resolvable:$true] %s97_s26 }
  0x13   : > { %s99_s28 = sshll.u32 %s91_s27, 4  ;;  %s1060_s30 = sshra.s32 %s98_s26, 4  ;;  %s100_s28 = int_to_ptr.vmem [resolvable:$true] %s99_s28  ;;  %s1061_s30 = int_to_ptr.hbm [resolvable:$true] %s1060_s30 }
  0x14   : > { %s1062_s2 = scalar_lea.hbm %s1061_s30, 40  ;;  %s1067_s5 = scalar_lea.hbm %s1519_s0, 320 }
  0x15   : > { %p1063_p13 = scmp.ne.s32.totalorder %s1061_s30, %s1062_s2  ;;  %p1068_p3 = scmp.lt.s32.totalorder %s1061_s30, %s1519_s0 }
  0x16   : > { %p1069_p4 = scmp.lt.s32.totalorder %s1067_s5, %s1062_s2 }
  0x17   : > { %p1065_p1 = pnand %p1064_p0, %p1063_p13 }
  0x18   : > { %p1070_p5 = por %p1069_p4, %p1068_p3 }
  0x19   : > { %p1066_p2 = pneg %p1065_p1 }
  0x1b   : > { %p1071_p7 = pnand %p1070_p5, %p1066_p2 }
  0x1d   : > { %1074 = shalt.err (!%p1071_p7)
}
  0x1e   : > { %s1158_s14 = smov 128   ;;  %s1159_s19 = smov 8  }
  0x1f   : > { %986 = dma.hbm_to_vmem [thread:$0]  (!%p1231_p12), %s98_s26, 640, %s100_s28, %s88_s29, %s1158_s14, %s1158_s14, %s1159_s19  }
  0x20   : > { %p925_p8 = scmp.ge.s32.totalorder %s1156_s9, 1  ;;  %p107_p9 = scmp.lt.s32.totalorder %s1156_s9, 9 }
  0x22   : > { %p108_p13 = pnand %p925_p8, %p107_p9 }
  0x23   : > { %s1248_s20 = sand.u32 (!%p108_p13), 1, %s1148_s7  }
  0x24   : > { %111 = sbr.rel (%p108_p13) target bundleno = 881 (0x371), region = 24  ;;  %s114_s22 = scalar_lea.sflag (!%p108_p13), [#allocation3], %s1248_s20 }
  0x25   : > { %s956_s21 = smul.u32 (!%p108_p13), 40, %s1248_s20 }
  0x27   : > { %s1252_s23 = scalar_lea.vmem (!%p108_p13), [#allocation2], %s956_s21 }
  0x29   : > { %1135 = dma.done.wait (%p1212_p6), %s114_s22, 640  }
  0x2a   : > { %1137 = vsyncadd (%p1212_p6), %s114_s22, 4294966656  ;;  %v1259_v0 = vld [vmem:[%s1252_s23 + $0x20] sm:$0xff]  ;;  %v1262_v1 = vld [vmem:[%s1252_s23 + $0x10] sm:$0xff]  ;;  %s1160_s16 = smov 120   ;;  %vm203_vm4 = vcmask 64512   ;;  %vm392_vm5 = vcmask 130048   ;;  %v192_v26 = vlaneseq }
  0x2b   : > { %143 = vadd.xlane.f32.xlu0 %v1259_v0  ;;  %224 = vmatpush.xpose.msra.mxu0 %v1262_v1  ;;  %v1267_v2 = vld [vmem:[%s1252_s23 + $0x8] sm:$0xff]  ;;  %v1272_v3 = vld [vmem:[%s1252_s23] sm:$0xff]  ;;  %v1304_v29 = vld [vmem:[%s1252_s23 + $0x18] sm:$0xff]  ;;  %v603_v31 = vmul.f32 %v1262_v1, %v1262_v1  ;;  %v1161_v36 = vmov 0.0   ;;  %s926_s11 = sshll.u32 %s1248_s20, 3  ;;  %s951_s13 = sshll.u32 %s1194_s10, 3 }
  0x2c   : > { %288 = vmatpush.msra.mxu1 %v1259_v0  ;;  %v1299_v27 = vshrl.u32 %v192_v26, 7  ;;  %v1301_v28 = vand.u32 127, %v192_v26  ;;  %v142_v30 = vmax.f32 %v1304_v29, 0.001  ;;  %v602_v32 = vmul.f32 %v1267_v2, %v1267_v2  ;;  %s846_s21 = scalar_lea.hbm %s1520_s1, %s951_s13  ;;  %s136_s10 = scalar_lea.vmem [#allocation5], %s926_s11 }
  0x2d   : > { %v595_v34 = vmul.f32 %v1272_v3, %v1272_v3  ;;  %vm719_vm14 = vcmp.gt.f32.partialorder %v1304_v29, 0.5  ;;  %s848_s22 = sshll.u32 %s136_s10, 4  ;;  %s850_s23 = sshll.u32 %s846_s21, 4  ;;  %s849_s22 = int_to_ptr.vmem [resolvable:$true] %s848_s22  ;;  %s851_s23 = int_to_ptr.hbm [resolvable:$true] %s850_s23 }
  0x2e   : > { %vm196_vm6 = vcmp.eq.s32.totalorder %v1299_v27, %v1301_v28  ;;  %v579_v35 = vmul.f32 %v142_v30, %v142_v30  ;;  %v604_v38 = vadd.f32 %v603_v31, %v602_v32 }
  0x2f   : > { %225 = vmatpush.xpose.msra.mxu0 %v1267_v2  ;;  %v1318_v37 = vsel %vm196_vm6, 1.0, %v1161_v36  ;;  %v596_v40 = vrot.slane %v595_v34, 4 }
  0x30   : > { %v605_v41 = vrot.slane %v604_v38, 4  ;;  %vm585_vm7 = vweird.f32 %v579_v35 }
  0x31   : > { %v597_v43 = vadd.f32 %v596_v40, %v595_v34 }
  0x32   : > { %v606_v46 = vadd.f32 %v605_v41, %v604_v38 }
  0x33   : > { %226 = vmatpush.xpose.msra.mxu0 %v1272_v3  ;;  %v598_v47 = vrot.slane %v597_v43, 2 }
  0x34   : > { %v607_v51 = vrot.slane %v606_v46, 2 }
  0x35   : > { %v599_v52 = vadd.f32 %v598_v47, %v597_v43 }
  0x36   : > { %227 = vmatmul.f32.vlgmr.msra.gmra.mxu0 %v1259_v0  ;;  %v608_v55 = vadd.f32 %v607_v51, %v606_v46 }
  0x37   : > { %v600_v58 = vrot.slane %v599_v52, 1 }
  0x38   : > { %v609_v62 = vrot.slane %v608_v55, 1 }
  0x9e   : > { %v1276_v4 = vpop.xlane.xlu0 %143 }
  0x9f   : > { %v1279_v5 = vmax.f32 %v1276_v4, 1.0  ;;  %vm145_vm11 = vcmp.gt.f32.partialorder %v1276_v4, 0.5 }
  0xa1   : > { %1030 = vrcp.f32 %v1279_v5  ;;  %v160_v10 = vand.u32 2147483648, %v1279_v5  ;;  %vm154_vm1 = vweird.f32 %v1279_v5  ;;  %v158_v12 = vand.u32 2147483647, %v1279_v5 }
  0xa2   : > { %1032 = vrcp.f32 %v579_v35 }
  0xa3   : > { %v161_v14 = vor.u32 1.1754944e-38, %v160_v10  ;;  %vm159_vm3 = vcmp.eq.f32.partialorder %v158_v12, 8.507059e+37  ;;  %1034 = vlog2.f32 %v1279_v5 }
  0xa7   : > { %v1031_v6 = vpop.eup %1030 }
  0xa8   : > { %v150_v7 = vmul.f32 %v1031_v6, %v1279_v5  ;;  %vm155_vm0 = vweird.f32 %v1031_v6  ;;  %v1033_v45 = vpop.eup %1032 }
  0xa9   : > { %vm156_vm2 = vmor %vm154_vm1, %vm155_vm0  ;;  %v581_v49 = vmul.f32 %v1033_v45, %v579_v35  ;;  %vm586_vm8 = vweird.f32 %v1033_v45 }
  0xaa   : > { %v151_v8 = vsub.f32 1.0, %v150_v7  ;;  %v1035_v7 = vpop.eup %1034  ;;  %vm1327_vm9 = vmor %vm585_vm7, %vm586_vm8  ;;  %vm199_vm8 = vcmp.gt.s32.totalorder %v1301_v28, %v1299_v27 }
  0xab   : > { %v582_v54 = vsub.f32 1.0, %v581_v49 }
  0xac   : > { %v152_v9 = vmul.f32 %v1031_v6, %v151_v8  ;;  %v601_v8 = vadd.f32 %v600_v58, %v599_v52 }
  0xad   : > { %v583_v61 = vmul.f32 %v1033_v45, %v582_v54 }
  0xae   : > { %v153_v11 = vadd.f32 %v1031_v6, %v152_v9  ;;  %v591_v9 = vand.u32 2147483648, %v579_v35 }
  0xaf   : > { %v584_v12 = vadd.f32 %v1033_v45, %v583_v61 }
  0xb0   : > { %v157_v13 = vsel %vm156_vm2, %v1031_v6, %v153_v11  ;;  %vm724_vm2 = vcmp.gt.f32.partialorder %v1259_v0, 0.5 }
  0xb1   : > { %v1286_v15 = vsel %vm159_vm3, %v161_v14, %v157_v13  ;;  %v589_v13 = vand.u32 2147483647, %v579_v35  ;;  %v588_v26 = vsel %vm1327_vm9, %v1033_v45, %v584_v12 }
  0xb3   : > { %v228_v16 = vpop.f32.mrf.mxu0  ;;  %vm590_vm10 = vcmp.eq.f32.partialorder %v589_v13, 8.507059e+37 }
  0xb4   : > { %v231_v17 = vmul.f32 %v228_v16, %v1286_v15 }
  0xb6   : > { %397 = vrot.lane.b32.xlu1 %v231_v17, %s1160_s16  ;;  %232 = vxpose.xlu0.b32.start.end [1/1] (short) (narrow) %v231_v17, 24  ;;  %v384_v18 = vmul.f32 %v231_v17, %v231_v17 }
  0xb7   : > { %936 = vmatpush.xpose.msk.msra.mxu3 %vm203_vm4, %v231_v17 }
  0xb8   : > { %v385_v19 = vsel %vm203_vm4, %v384_v18, 0.0 }
  0xb9   : > { %386 = vadd.xlane.f32.xlu2 %v385_v19 }
  0xba   : > { %937 = vmatmul.msk.f32.vlgmr.msra.gmra.mxu3 %vm203_vm4, %v231_v17 }
  0xbb   : > { %645 = vmatpush.msrb.mxu3 %v1262_v1 }
  0xbd   : > { %646 = vmatpush.msrb.mxu3 %v1267_v2 }
  0xbe   : > { %389 = vrot.lane.b32.xlu1 %v384_v18, %s1160_s16  ;;  %s836_s16 = scalar_lea.sflag [#allocation4], %s1248_s20 }
 0x128   : > { %v398_v20 = vpop.permute.xlu1 %397 }
 0x129   : > { %934 = vmatpush.xpose.msk.msra.mxu2 %vm392_vm5, %v398_v20  ;;  %939 = vmatmul.msk.f32.vlgmr.msrb.gmra.mxu3 %vm392_vm5, %v398_v20 }
 0x12c   : > { %935 = vmatmul.msk.f32.vlgmr.msra.gmra.mxu2 %vm392_vm5, %v398_v20  ;;  %v387_v56 = vpop.xlane.xlu2 %386  ;;  %v766_v20 = vmul.f32 0.6931472, %v1035_v7 }
 0x12d   : > { %626 = vmatpush.msrb.mxu2 %v1272_v3 }
 0x12e   : > { %v767_v34 = vmul.f32 %v766_v20, %v1259_v0  ;;  %v1345_v20 = vsel %vm145_vm11, 1.0, %v1161_v36 }
 0x130   : > { %v390_v21 = vpop.permute.xlu1 %389 }
 0x131   : > { %v393_v22 = vsel %vm392_vm5, %v390_v21, 0.0  ;;  %v651_v21 = vadd.f32 %v601_v8, %v387_v56 }
 0x132   : > { %394 = vadd.xlane.f32.xlu2 %v393_v22  ;;  %v592_v22 = vor.u32 1.1754944e-38, %v591_v9 }
 0x134   : > { %938 = vmatmul.msk.f32.vlgmr.msrb.gmra.mxu2 %vm203_vm4, %v231_v17  ;;  %v593_v35 = vsel %vm590_vm10, %v592_v22, %v588_v26  ;;  %v202_v26 = vmul.f32 %v1318_v37, %v1345_v20  ;;  %vm164_vm10 = vcmask 7168  }
 0x135   : > { %v655_v43 = vperm.slane %v593_v35, 0  ;;  %v661_v47 = vperm.slane %v593_v35, 1  ;;  %v165_v28 = vsel %vm164_vm10, %v1345_v20, 0.0 }
 0x13d   : > { %v1313_v33 = vpop.f32.mrf.mxu3 }
 0x13e   : > { %v513_v39 = vmul.f32 %v1318_v37, %v1313_v33  ;;  %v522_v46 = vmul.f32 2.0, %v1313_v33 }
 0x140   : > { %v514_v42 = vsel %vm203_vm4, %v513_v39, 0.0 }
 0x141   : > { %v515_v44 = vrot.slane %v514_v42, 4 }
 0x143   : > { %v516_v48 = vadd.f32 %v515_v44, %v514_v42 }
 0x145   : > { %v517_v53 = vrot.slane %v516_v48, 2 }
 0x147   : > { %v518_v60 = vadd.f32 %v517_v53, %v516_v48  ;;  %v768_v48 = vrot.slane %v767_v34, 4 }
 0x149   : > { %v519_v11 = vrot.slane %v518_v60, 1  ;;  %v769_v58 = vadd.f32 %v768_v48, %v767_v34 }
 0x15a   : > { %v248_v23 = vpop.trf.xlu0 }
 0x15b   : > { %930 = vmatmul.msk.f32.vlgmr.msra.gmra.mxu1 %vm203_vm4, %v248_v23 }
 0x162   : > { %v249_v24 = vpop.trf.xlu0 }
 0x163   : > { %931 = vmatmul.msk.f32.gmra.mxu1 %vm203_vm4, %v249_v24 }
 0x16a   : > { %v250_v25 = vpop.trf.xlu0 }
 0x16b   : > { %932 = vmatmul.msk.f32.gmra.mxu1 %vm203_vm4, %v250_v25  ;;  %v520_v25 = vadd.f32 %v519_v11, %v518_v60 }
 0x16d   : > { %v521_v41 = vadd.f32 %v520_v25, %v387_v56 }
 0x16f   : > { %v523_v54 = vsub.f32 %v521_v41, %v522_v46 }
 0x171   : > { %v1340_v60 = vmax.f32 %v523_v54, 1e-06 }
 0x173   : > { %vm532_vm7 = vcmp.eq.f32.partialorder %v1340_v60, inf  ;;  %vm534_vm9 = vcmp.eq.f32.partialorder %v1340_v60, 0.0 }
 0x1a5   : > { %v1331_v18 = vpop.xlane.xlu2 %394 }
 0x1ac   : > { %v648_v5 = vpop.f32.mrf.mxu3 }
 0x1ad   : > { %v658_v23 = vmul.f32 2.0, %v648_v5 }
 0x1af   : > { %v1323_v50 = vpop.f32.mrf.mxu2 }
 0x1b7   : > { %v628_v6 = vpop.f32.mrf.mxu2 }
 0x1b8   : > { %v652_v16 = vmul.f32 2.0, %v628_v6 }
 0x1ba   : > { %v653_v31 = vsub.f32 %v651_v21, %v652_v16 }
 0x1bc   : > { %v654_v42 = vmax.f32 %v653_v31, 0.0 }
 0x1d8   : > { %v290_v57 = vpop.f32.mrf.mxu1 }
 0x1d9   : > { %v299_v59 = vsub.f32 %v1272_v3, %v290_v57  ;;  %v610_v3 = vadd.f32 %v609_v62, %v608_v55  ;;  %v656_v55 = vmul.f32 %v655_v43, %v654_v42  ;;  %v770_v62 = vrot.slane %v769_v58, 2 }
 0x1db   : > { %v302_v63 = vadd.f32 1e-08, %v299_v59  ;;  %v657_v30 = vadd.f32 %v610_v3, %v1331_v18 }
 0x1dd   : > { %v305_v10 = vmul.f32 %v302_v63, %v302_v63  ;;  %v659_v38 = vsub.f32 %v657_v30, %v658_v23 }
 0x1df   : > { %v306_v17 = vrot.slane %v305_v10, 4  ;;  %v660_v49 = vmax.f32 %v659_v38, 0.0  ;;  %v204_v38 = vsel %vm203_vm4, %v202_v26, 0.0 }
 0x1e0   : > { %v293_v19 = vpop.f32.mrf.mxu1 }
 0x1e1   : > { %v307_v24 = vadd.f32 %v306_v17, %v305_v10  ;;  %v300_v40 = vsub.f32 %v1267_v2, %v293_v19  ;;  %v662_v2 = vmul.f32 %v661_v47, %v660_v49  ;;  %v771_v10 = vadd.f32 %v770_v62, %v769_v58 }
 0x1e2   : > { %v205_v47 = vrot.slane %v204_v38, 4 }
 0x1e3   : > { %v308_v32 = vrot.slane %v307_v24, 2  ;;  %v303_v52 = vadd.f32 1e-08, %v300_v40  ;;  %v663_v61 = vadd.f32 %v662_v2, %v656_v55  ;;  %v772_v16 = vrot.slane %v771_v10, 1 }
 0x1e5   : > { %v309_v39 = vadd.f32 %v308_v32, %v307_v24  ;;  %v324_v56 = vmul.f32 %v303_v52, %v303_v52  ;;  %v664_v8 = vsub.f32 0.0, %v663_v61  ;;  %v773_v24 = vadd.f32 %v772_v16, %v771_v10 }
 0x1e7   : > { %v310_v44 = vrot.slane %v309_v39, 1  ;;  %v665_v13 = vmul.f32 1.442695, %v664_v8  ;;  %v774_v34 = vsub.f32 %v1304_v29, %v773_v24 }
 0x1e8   : > { %v296_v45 = vpop.f32.mrf.mxu1 }
 0x1e9   : > { %v311_v51 = vadd.f32 %v310_v44, %v309_v39  ;;  %v301_v53 = vsub.f32 %v1262_v1, %v296_v45  ;;  %v775_v43 = vand.u32 2147483647, %v774_v34  ;;  %v1162_v45 = vmov 0  }
 0x1ea   : > { %v720_v48 = vsel %vm719_vm14, 1, %v1162_v45  ;;  %vm561_vm14 = vcmp.eq.f32.partialorder %v1331_v18, inf }
 0x1eb   : > { %v304_v57 = vadd.f32 1e-08, %v301_v53  ;;  %1036 = vrsqrt.f32 %v311_v51  ;;  %vm319_vm12 = vcmp.eq.f32.partialorder %v311_v51, inf  ;;  %v322_v25 = vand.u32 2147483648, %v311_v51 }
 0x1ec   : > { %1038 = vrsqrt.f32 %v1340_v60  ;;  %vm321_vm13 = vcmp.eq.f32.partialorder %v311_v51, 0.0  ;;  %v776_v52 = vperm.slane %v775_v43, 2  ;;  %v721_v54 = vperm.slane %v720_v48, 3 }
 0x1ed   : > { %v325_v59 = vmul.f32 %v304_v57, %v304_v57  ;;  %1040 = vpow2.f32 %v665_v13  ;;  %v206_v57 = vadd.f32 %v205_v47, %v204_v38  ;;  %v535_v13 = vand.u32 2147483648, %v1340_v60 }
 0x1ee   : > { %vm722_vm0 = vcmp.eq.s32.totalorder %v721_v54, 1 }
 0x1ef   : > { %v326_v33 = vadd.f32 %v325_v59, %v324_v56  ;;  %v777_v56 = vmul.f32 %v776_v52, %v1259_v0  ;;  %v207_v61 = vrot.slane %v206_v57, 2 }
 0x1f1   : > { %v1037_v63 = vpop.eup %1036  ;;  %v327_v6 = vrot.slane %v326_v33, 4 }
 0x1f2   : > { %v313_v7 = vmul.f32 %v1037_v63, %v311_v51  ;;  %v1039_v14 = vpop.eup %1038 }
 0x1f3   : > { %v328_v1 = vadd.f32 %v327_v6, %v326_v33  ;;  %v526_v22 = vmul.f32 %v1039_v14, %v1340_v60  ;;  %v1041_v35 = vpop.eup %1040 }
 0x1f4   : > { %v314_v9 = vmul.f32 %v1037_v63, %v313_v7  ;;  %v667_v44 = vmax.f32 %v1041_v35, 0.001  ;;  %v421_v35 = vmul.f32 %v1318_v37, %v1323_v50 }
 0x1f5   : > { %v329_v11 = vrot.slane %v328_v1, 2  ;;  %v527_v31 = vmul.f32 %v1039_v14, %v526_v22 }
 0x1f6   : > { %v315_v12 = vmul.f32 0.5, %v314_v9  ;;  %v668_v53 = vmin.f32 %v667_v44, 0.999 }
 0x1f7   : > { %v330_v5 = vadd.f32 %v329_v11, %v328_v1  ;;  %v528_v41 = vmul.f32 0.5, %v527_v31  ;;  %v208_v1 = vadd.f32 %v207_v61, %v206_v57 }
 0x1f8   : > { %v316_v3 = vsub.f32 1.5, %v315_v12  ;;  %vm718_vm15 = vcmp.gt.f32.partialorder %v668_v53, 0.5  ;;  %v673_v11 = vsub.f32 1.0, %v668_v53 }
 0x1f9   : > { %v331_v17 = vrot.slane %v330_v5, 1  ;;  %vm1355_vm1 = vmand %vm718_vm15, %vm722_vm0  ;;  %vm563_vm15 = vcmp.eq.f32.partialorder %v1331_v18, 0.0 }
 0x1fa   : > { %v317_v19 = vmul.f32 %v1037_v63, %v316_v3  ;;  %vm730_vm6 = vmor %vm1355_vm1, %vm724_vm2 }
 0x1fb   : > { %v332_v21 = vadd.f32 %v331_v17, %v330_v5  ;;  %v941_v5 = vsel %vm730_vm6, 1.0, %v1161_v36  ;;  %vm725_vm11 = vmand %vm1355_vm1, %vm724_vm2 }
 0x1fc   : > { %v318_v23 = vmul.f32 %v317_v19, %v311_v51  ;;  %v929_v19 = vsel %vm199_vm8, 1.0, %v1161_v36 }
 0x1fd   : > { %1042 = vrsqrt.f32 %v332_v21  ;;  %vm340_vm3 = vcmp.eq.f32.partialorder %v332_v21, inf  ;;  %v343_v63 = vand.u32 2147483648, %v332_v21  ;;  %vm342_vm5 = vcmp.eq.f32.partialorder %v332_v21, 0.0 }
 0x1fe   : > { %v320_v4 = vsel %vm319_vm12, %v311_v51, %v318_v23  ;;  %v529_v51 = vsub.f32 1.5, %v528_v41  ;;  %1044 = vlog2.f32 %v673_v11  ;;  %v448_v23 = vmul.f32 %v929_v19, %v1345_v20 }
 0x1ff   : > { %v323_v30 = vsel %vm321_vm13, %v322_v25, %v320_v4  ;;  %1046 = vlog2.f32 %v668_v53  ;;  %v672_v4 = vsub.f32 1.0, %v1259_v0 }
 0x200   : > { %v365_v32 = vmax.f32 %v323_v30, 0.0  ;;  %v530_v2 = vmul.f32 %v1039_v14, %v529_v51  ;;  %v209_v14 = vrot.slane %v208_v1, 1 }
 0x202   : > { %v366_v39 = vmul.f32 %v365_v32, %v365_v32  ;;  %v531_v6 = vmul.f32 %v530_v2, %v1340_v60 }
 0x203   : > { %v1043_v40 = vpop.eup %1042 }
 0x204   : > { %v367_v42 = vmul.f32 %v366_v39, %v1259_v0  ;;  %v334_v46 = vmul.f32 %v1043_v40, %v332_v21  ;;  %v533_v10 = vsel %vm532_vm7, %v1340_v60, %v531_v6  ;;  %v1045_v24 = vpop.eup %1044  ;;  %v940_v39 = vsel %vm725_vm11, 1.0, %v1161_v36 }
 0x205   : > { %v536_v16 = vsel %vm534_vm9, %v535_v13, %v533_v10  ;;  %v1047_v26 = vpop.eup %1046  ;;  %v675_v30 = vmul.f32 0.6931472, %v1045_v24  ;;  %v564_v24 = vand.u32 2147483648, %v1331_v18  ;;  %vm799_vm7 = vcmp.eq.s32.totalorder %v1299_v27, 1 }
 0x206   : > { %368 = vadd.xlane.f32.xlu2 %v367_v42  ;;  %v335_v49 = vmul.f32 %v1043_v40, %v334_v46  ;;  %v537_v22 = vsub.f32 0.4, %v536_v16  ;;  %v670_v34 = vmul.f32 0.6931472, %v1047_v26  ;;  %v422_v42 = vsel %vm203_vm4, %v421_v35, 0.0 }
 0x207   : > { %v676_v38 = vmul.f32 %v675_v30, %v672_v4  ;;  %v679_v46 = vperm.slane %v1304_v29, 3  ;;  %v423_v47 = vrot.slane %v422_v42, 4  ;;  %vm804_vm11 = vcmp.eq.s32.totalorder %v1299_v27, 2 }
 0x208   : > { %v336_v55 = vmul.f32 0.5, %v335_v49  ;;  %v538_v25 = vmax.f32 %v537_v22, 0.0  ;;  %v671_v41 = vmul.f32 %v670_v34, %v1259_v0 }
 0x209   : > { %v1395_v37 = vmul.f32 %v1345_v20, %v679_v46  ;;  %v424_v48 = vadd.f32 %v423_v47, %v422_v42 }
 0x20a   : > { %v337_v58 = vsub.f32 1.5, %v336_v55  ;;  %v539_v32 = vmul.f32 %v538_v25, %v538_v25  ;;  %v677_v43 = vadd.f32 %v676_v38, %v671_v41  ;;  %v430_v55 = vmul.f32 2.0, %v1323_v50 }
 0x20b   : > { %v425_v51 = vrot.slane %v424_v48, 2 }
 0x20c   : > { %v338_v59 = vmul.f32 %v1043_v40, %v337_v58  ;;  %v678_v45 = vsub.f32 0.0, %v677_v43 }
 0x20d   : > { %v426_v52 = vadd.f32 %v425_v51, %v424_v48 }
 0x20e   : > { %778 = vadd.xlane.f32.xlu2 %v777_v56  ;;  %v339_v33 = vmul.f32 %v338_v59, %v332_v21  ;;  %v681_v49 = vmul.f32 %v1395_v37, %v678_v45 }
 0x210   : > { %v341_v7 = vsel %vm340_vm3, %v332_v21, %v339_v33  ;;  %v210_v21 = vadd.f32 %v209_v14, %v208_v1 }
 0x211   : > { %v344_v8 = vsel %vm342_vm5, %v343_v63, %v341_v7 }
 0x212   : > { %v933_v9 = vadd.f32 -1.0, %v344_v8  ;;  %v1377_v60 = vmul.f32 %v448_v23, %v210_v21 }
 0x214   : > { %v346_v12 = vmax.f32 %v933_v9, 0.0  ;;  %v450_v31 = vsel %vm203_vm4, %v1377_v60, 0.0  ;;  %v540_v40 = vmul.f32 %v539_v32, %v1377_v60 }
 0x216   : > { %733 = vadd.xlane.f32.xlu2 %v941_v5  ;;  %v347_v3 = vmul.f32 %v346_v12, %v346_v12  ;;  %v541_v44 = vsel %vm203_vm4, %v540_v40, 0.0 }
 0x218   : > { %v348_v17 = vmul.f32 %v347_v3, %v1259_v0  ;;  %v427_v0 = vrot.slane %v426_v52, 1 }
 0x21a   : > { %349 = vadd.xlane.f32.xlu1 %v348_v17  ;;  %v428_v53 = vadd.f32 %v427_v0, %v426_v52 }
 0x21c   : > { %v429_v54 = vadd.f32 %v428_v53, %v1331_v18 }
 0x21e   : > { %166 = vadd.xlane.f32.xlu2 %v165_v28  ;;  %v431_v57 = vsub.f32 %v429_v54, %v430_v55 }
 0x220   : > { %v432_v58 = vmax.f32 %v431_v57, 1e-06 }
 0x222   : > { %451 = vadd.xlane.f32.xlu1 %v450_v31  ;;  %1048 = vrsqrt.f32 %v432_v58  ;;  %vm440_vm12 = vcmp.eq.f32.partialorder %v432_v58, inf  ;;  %v443_v1 = vand.u32 2147483648, %v432_v58  ;;  %vm442_vm13 = vcmp.eq.f32.partialorder %v432_v58, 0.0 }
 0x223   : > { %1050 = vrsqrt.f32 %v1331_v18 }
 0x226   : > { %728 = vadd.xlane.f32.xlu2 %v940_v39 }
 0x228   : > { %v1049_v29 = vpop.eup %1048 }
 0x229   : > { %v434_v2 = vmul.f32 %v1049_v29, %v432_v58  ;;  %v1051_v62 = vpop.eup %1050 }
 0x22a   : > { %542 = vadd.xlane.f32.xlu1 %v541_v44  ;;  %v555_v6 = vmul.f32 %v1051_v62, %v1331_v18 }
 0x22b   : > { %v435_v56 = vmul.f32 %v1049_v29, %v434_v2 }
 0x22c   : > { %v556_v8 = vmul.f32 %v1051_v62, %v555_v6 }
 0x22d   : > { %v436_v59 = vmul.f32 0.5, %v435_v56 }
 0x22e   : > { %v557_v9 = vmul.f32 0.5, %v556_v8 }
 0x22f   : > { %v437_v61 = vsub.f32 1.5, %v436_v59 }
 0x230   : > { %v558_v11 = vsub.f32 1.5, %v557_v9 }
 0x231   : > { %v438_v33 = vmul.f32 %v1049_v29, %v437_v61 }
 0x232   : > { %682 = vadd.xlane.f32.xlu1 %v681_v49  ;;  %v559_v3 = vmul.f32 %v1051_v62, %v558_v11 }
 0x233   : > { %v439_v63 = vmul.f32 %v438_v33, %v432_v58 }
 0x234   : > { %v560_v19 = vmul.f32 %v559_v3, %v1331_v18 }
 0x235   : > { %v441_v7 = vsel %vm440_vm12, %v432_v58, %v439_v63 }
 0x236   : > { %v444_v50 = vsel %vm442_vm13, %v443_v1, %v441_v7  ;;  %v562_v23 = vsel %vm561_vm14, %v1331_v18, %v560_v19  ;;  %vm794_vm13 = vcmp.eq.s32.totalorder %v1299_v27, 0 }
 0x237   : > { %v445_v10 = vsub.f32 3.0, %v444_v50  ;;  %v565_v25 = vsel %vm563_vm15, %v564_v24, %v562_v23 }
 0x238   : > { %v566_v30 = vmul.f32 %v1345_v20, %v565_v25 }
 0x239   : > { %v446_v5 = vmax.f32 %v445_v10, 0.0 }
 0x23a   : > { %v567_v32 = vsel %vm164_vm10, %v566_v30, 0.0 }
 0x23b   : > { %v447_v17 = vmul.f32 %v446_v5, %v446_v5 }
 0x23d   : > { %v461_v22 = vmul.f32 %v1377_v60, %v447_v17 }
 0x23f   : > { %v462_v28 = vsel %vm203_vm4, %v461_v22, 0.0 }
 0x279   : > { %v369_v12 = vpop.xlane.xlu2 %368 }
 0x27a   : > { %v370_v13 = vmul.f32 %v369_v12, %v1286_v15 }
 0x27c   : > { %v371_v14 = vmul.f32 %v1345_v20, %v370_v13 }
 0x27e   : > { %v372_v16 = vsel %vm164_vm10, %v371_v14, 0.0 }
 0x27f   : > { %373 = vadd.xlane.f32.xlu2 %v372_v16 }
 0x281   : > { %v779_v21 = vpop.xlane.xlu2 %778 }
 0x282   : > { %v780_v43 = vmul.f32 %v779_v21, %v1286_v15 }
 0x284   : > { %v781_v54 = vmul.f32 %v1345_v20, %v780_v43 }
 0x287   : > { %463 = vadd.xlane.f32.xlu2 %v462_v28 }
 0x289   : > { %v734_v26 = vpop.xlane.xlu2 %733 }
 0x28a   : > { %v736_v4 = vadd.f32 1e-06, %v734_v26 }
 0x28c   : > { %1052 = vrcp.f32 %v736_v4  ;;  %v748_v46 = vand.u32 2147483648, %v736_v4  ;;  %v746_v45 = vand.u32 2147483647, %v736_v4  ;;  %vm742_vm0 = vweird.f32 %v736_v4 }
 0x28d   : > { %v350_v31 = vpop.xlane.xlu1 %349 }
 0x28e   : > { %v351_v60 = vmul.f32 %v350_v31, %v1286_v15  ;;  %v749_v52 = vor.u32 1.1754944e-38, %v748_v46  ;;  %vm747_vm2 = vcmp.eq.f32.partialorder %v746_v45, 8.507059e+37 }
 0x28f   : > { %568 = vadd.xlane.f32.xlu2 %v567_v32 }
 0x290   : > { %v352_v34 = vmul.f32 %v1345_v20, %v351_v60 }
 0x291   : > { %v167_v35 = vpop.xlane.xlu2 %166 }
 0x292   : > { %v1053_v38 = vpop.eup %1052  ;;  %v168_v39 = vrot.slane %v167_v35, 4  ;;  %v353_v18 = vsel %vm164_vm10, %v352_v34, 0.0 }
 0x293   : > { %v738_v40 = vmul.f32 %v1053_v38, %v736_v4  ;;  %354 = vadd.xlane.f32.xlu0 %v353_v18  ;;  %vm743_vm4 = vweird.f32 %v1053_v38 }
 0x294   : > { %v169_v41 = vadd.f32 %v168_v39, %v167_v35  ;;  %vm744_vm1 = vmor %vm742_vm0, %vm743_vm4  ;;  %vm814_vm0 = vcmp.eq.s32.totalorder %v1299_v27, 4 }
 0x295   : > { %v739_v42 = vsub.f32 1.0, %v738_v40  ;;  %v452_v56 = vpop.xlane.xlu1 %451 }
 0x296   : > { %v170_v44 = vrot.slane %v169_v41, 2  ;;  %v453_v63 = vrot.slane %v452_v56, 4 }
 0x297   : > { %692 = vadd.xlane.f32.xlu2 %v1395_v37  ;;  %v740_v47 = vmul.f32 %v1053_v38, %v739_v42  ;;  %v782_v37 = vsel %vm164_vm10, %v781_v54, 0.0 }
 0x298   : > { %v171_v48 = vadd.f32 %v170_v44, %v169_v41  ;;  %v454_v9 = vadd.f32 %v453_v63, %v452_v56 }
 0x299   : > { %v741_v49 = vadd.f32 %v1053_v38, %v740_v47  ;;  %v729_v51 = vpop.xlane.xlu2 %728 }
 0x29a   : > { %v735_v0 = vadd.f32 1e-06, %v729_v51  ;;  %v172_v53 = vrot.slane %v171_v48, 1  ;;  %v455_v3 = vrot.slane %v454_v9, 2 }
 0x29b   : > { %v745_v55 = vsel %vm744_vm1, %v1053_v38, %v741_v49  ;;  %vm809_vm1 = vcmp.eq.s32.totalorder %v1299_v27, 3 }
 0x29c   : > { %v750_v15 = vsel %vm747_vm2, %v749_v52, %v745_v55  ;;  %v173_v57 = vadd.f32 %v172_v53, %v171_v48  ;;  %v456_v30 = vadd.f32 %v455_v3, %v454_v9 }
 0x29d   : > { %v751_v58 = vmul.f32 %v750_v15, %v735_v0  ;;  %v543_v61 = vpop.xlane.xlu1 %542 }
 0x29e   : > { %957 = vpush %v173_v57  ;;  %v544_v8 = vrot.slane %v543_v61, 4  ;;  %v457_v40 = vrot.slane %v456_v30, 1 }
 0x29f   : > { %783 = vadd.xlane.f32.xlu2 %v782_v37  ;;  %v752_v29 = vmul.f32 %v1345_v20, %v751_v58 }
 0x2a0   : > { %v545_v13 = vadd.f32 %v544_v8, %v543_v61  ;;  %v458_v51 = vadd.f32 %v457_v40, %v456_v30 }
 0x2a1   : > { %v753_v2 = vsel %vm164_vm10, %v752_v29, 0.0 }
 0x2a2   : > { %754 = vadd.xlane.f32.xlu1 %v753_v2  ;;  %v546_v21 = vrot.slane %v545_v13, 2 }
 0x2a4   : > { %v547_v34 = vadd.f32 %v546_v21, %v545_v13 }
 0x2a5   : > { %v683_v6 = vpop.xlane.xlu1 %682 }
 0x2a6   : > { %v684_v10 = vrot.slane %v683_v6, 4  ;;  %v548_v44 = vrot.slane %v547_v34, 1 }
 0x2a8   : > { %v685_v16 = vadd.f32 %v684_v10, %v683_v6  ;;  %v549_v55 = vadd.f32 %v548_v44, %v547_v34 }
 0x2aa   : > { %v686_v25 = vrot.slane %v685_v16, 2 }
 0x2ac   : > { %v687_v41 = vadd.f32 %v686_v25, %v685_v16 }
 0x2ae   : > { %v688_v52 = vrot.slane %v687_v41, 1 }
 0x2b0   : > { %v689_v2 = vadd.f32 %v688_v52, %v687_v41 }
 0x2cf   : > { %s1423_s24 = spop %957 }
 0x2d0   : > { %v175_v8 = vstv %s1423_s24  ;;  %s1104_s24 = sshra.s32 %s851_s23, 4  ;;  %s1105_s24 = int_to_ptr.hbm [resolvable:$true] %s1104_s24 }
 0x2d1   : > { %vm1439_vm8 = vcmp.ge.f32.partialorder %v175_v8, 2.0  ;;  %p1111_p1 = scmp.lt.s32.totalorder %s1105_s24, %s1520_s1 }
 0x2f2   : > { %v374_v59 = vpop.xlane.xlu2 %373 }
 0x2f3   : > { %v375_v62 = vrot.slane %v374_v59, 4 }
 0x2f5   : > { %v376_v1 = vadd.f32 %v375_v62, %v374_v59 }
 0x2f7   : > { %v377_v20 = vrot.slane %v376_v1, 2 }
 0x2f9   : > { %v378_v28 = vadd.f32 %v377_v20, %v376_v1  ;;  %v176_v1 = vmax.f32 %v175_v8, 1.0 }
 0x2fa   : > { %v464_v33 = vpop.xlane.xlu2 %463 }
 0x2fb   : > { %v465_v7 = vrot.slane %v464_v33, 4  ;;  %v379_v35 = vrot.slane %v378_v28, 1  ;;  %1054 = vrcp.f32 %v176_v1  ;;  %v188_v16 = vand.u32 2147483648, %v176_v1 }
 0x2fc   : > { %vm182_vm5 = vweird.f32 %v176_v1 }
 0x2fd   : > { %v466_v12 = vadd.f32 %v465_v7, %v464_v33  ;;  %v380_v45 = vadd.f32 %v379_v35, %v378_v28 }
 0x2ff   : > { %v467_v19 = vrot.slane %v466_v12, 2 }
 0x301   : > { %v468_v31 = vadd.f32 %v467_v19, %v466_v12 }
 0x302   : > { %v569_v50 = vpop.xlane.xlu2 %568 }
 0x303   : > { %v570_v11 = vrot.slane %v569_v50, 4  ;;  %v469_v42 = vrot.slane %v468_v31, 1 }
 0x305   : > { %v571_v5 = vadd.f32 %v570_v11, %v569_v50  ;;  %v470_v53 = vadd.f32 %v469_v42, %v468_v31  ;;  %v1055_v50 = vpop.eup %1054 }
 0x306   : > { %v355_v14 = vpop.xlane.xlu0 %354  ;;  %v178_v9 = vmul.f32 %v1055_v50, %v176_v1  ;;  %vm183_vm3 = vweird.f32 %v1055_v50 }
 0x307   : > { %v356_v17 = vrot.slane %v355_v14, 4  ;;  %v572_v23 = vrot.slane %v571_v5, 2  ;;  %vm184_vm6 = vmor %vm182_vm5, %vm183_vm3 }
 0x308   : > { %v179_v10 = vsub.f32 1.0, %v178_v9 }
 0x309   : > { %v357_v22 = vadd.f32 %v356_v17, %v355_v14  ;;  %v573_v38 = vadd.f32 %v572_v23, %v571_v5  ;;  %v186_v17 = vand.u32 2147483647, %v176_v1 }
 0x30a   : > { %v693_v24 = vpop.xlane.xlu2 %692  ;;  %v180_v13 = vmul.f32 %v1055_v50, %v179_v10 }
 0x30b   : > { %v358_v26 = vrot.slane %v357_v22, 2  ;;  %v694_v4 = vrot.slane %v693_v24, 4  ;;  %v574_v48 = vrot.slane %v573_v38, 1  ;;  %vm187_vm9 = vcmp.eq.f32.partialorder %v186_v17, 8.507059e+37 }
 0x30c   : > { %v181_v14 = vadd.f32 %v1055_v50, %v180_v13 }
 0x30d   : > { %v359_v60 = vadd.f32 %v358_v26, %v357_v22  ;;  %v695_v32 = vadd.f32 %v694_v4, %v693_v24  ;;  %v575_v57 = vadd.f32 %v574_v48, %v573_v38  ;;  %v189_v24 = vor.u32 1.1754944e-38, %v188_v16 }
 0x30e   : > { %v185_v21 = vsel %vm184_vm6, %v1055_v50, %v181_v14  ;;  %v942_v48 = vsel %vm794_vm13, 1.0, %v1161_v36  ;;  %vm819_vm6 = vcmp.eq.s32.totalorder %v1299_v27, 5 }
 0x30f   : > { %v696_v39 = vrot.slane %v695_v32, 2  ;;  %v360_v18 = vrot.slane %v359_v60, 1  ;;  %v1444_v31 = vsel %vm187_vm9, %v189_v24, %v185_v21  ;;  %v947_v50 = vsel %vm819_vm6, 1.0, %v1161_v36 }
 0x311   : > { %v361_v43 = vadd.f32 %v360_v18, %v359_v60  ;;  %v697_v46 = vadd.f32 %v696_v39, %v695_v32  ;;  %v943_v60 = vsel %vm799_vm7, 1.0, %v1161_v36  ;;  %vm824_vm7 = vcmp.eq.s32.totalorder %v1299_v27, 6 }
 0x312   : > { %v784_v47 = vpop.xlane.xlu2 %783 }
 0x313   : > { %v785_v49 = vrot.slane %v784_v47, 4  ;;  %959 = vpush %v361_v43  ;;  %v698_v0 = vrot.slane %v697_v46, 1 }
 0x314   : > { %961 = vpush %v380_v45 }
 0x315   : > { %v786_v54 = vadd.f32 %v785_v49, %v784_v47  ;;  %963 = vpush %v458_v51  ;;  %v755_v15 = vpop.xlane.xlu1 %754  ;;  %v699_v37 = vadd.f32 %v698_v0, %v697_v46 }
 0x316   : > { %965 = vpush %v470_v53  ;;  %v756_v58 = vrot.slane %v755_v15, 4 }
 0x317   : > { %v787_v29 = vrot.slane %v786_v54, 2  ;;  %967 = vpush %v549_v55 }
 0x318   : > { %969 = vpush %v575_v57  ;;  %v757_v56 = vadd.f32 %v756_v58, %v755_v15 }
 0x319   : > { %v788_v59 = vadd.f32 %v787_v29, %v786_v54  ;;  %971 = vpush %v689_v2  ;;  %v944_v54 = vsel %vm804_vm11, 1.0, %v1161_v36  ;;  %v945_v29 = vsel %vm809_vm1, 1.0, %v1161_v36 }
 0x31a   : > { %v758_v61 = vrot.slane %v757_v56, 2  ;;  %973 = vpush %v699_v37 }
 0x31b   : > { %v789_v62 = vrot.slane %v788_v59, 1 }
 0x31c   : > { %v759_v33 = vadd.f32 %v758_v61, %v757_v56 }
 0x31d   : > { %v790_v7 = vadd.f32 %v789_v62, %v788_v59 }
 0x31e   : > { %v760_v63 = vrot.slane %v759_v33, 1 }
 0x320   : > { %v761_v6 = vadd.f32 %v760_v63, %v759_v33  ;;  %v946_v33 = vsel %vm814_vm0, 1.0, %v1161_v36 }
 0x322   : > { %975 = vpush %v761_v6 }
 0x323   : > { %977 = vpush %v790_v7 }
 0x344   : > { %s1426_s25 = spop %959 }
 0x345   : > { %s1428_s26 = spop %961  ;;  %v363_v28 = vstv %s1426_s25  ;;  %s1106_s25 = scalar_lea.hbm %s1105_s24, 8 }
 0x346   : > { %s964_s27 = spop %963  ;;  %v364_v34 = vmul.f32 %v363_v28, %v1444_v31  ;;  %v382_v0 = vstv %s1428_s26  ;;  %p1107_p6 = scmp.ne.s32.totalorder %s1105_s24, %s1106_s25 }
 0x347   : > { %v460_v11 = vstv %s964_s27  ;;  %s1430_s28 = spop %965  ;;  %v383_v56 = vmul.f32 %v382_v0, %v1444_v31 }
 0x348   : > { %v473_v12 = vmax.f32 %v460_v11, 1.0  ;;  %s1432_s29 = spop %967  ;;  %v472_v38 = vstv %s1430_s28  ;;  %v802_v15 = vmul.f32 %v943_v60, %v364_v34  ;;  %p1108_p12 = pnand %p1107_p6, %p1218_p10 }
 0x349   : > { %s1434_s30 = spop %969  ;;  %v551_v18 = vstv %s1432_s29  ;;  %v817_v9 = vmul.f32 %v946_v33, %v383_v56  ;;  %s1110_s28 = scalar_lea.hbm %s1520_s1, 64 }
 0x34a   : > { %1056 = vrcp.f32 %v473_v12  ;;  %s1436_s2 = spop %971  ;;  %v485_v25 = vand.u32 2147483648, %v473_v12  ;;  %v483_v30 = vand.u32 2147483647, %v473_v12  ;;  %vm479_vm12 = vweird.f32 %v473_v12  ;;  %p1109_p0 = pneg %p1108_p12 }
 0x34b   : > { %s974_s3 = spop %973  ;;  %v577_v42 = vstv %s1434_s30  ;;  %v691_v62 = vstv %s1436_s2  ;;  %p1112_p2 = scmp.lt.s32.totalorder %s1110_s28, %s1106_s25 }
 0x34c   : > { %v701_v20 = vstv %s974_s3  ;;  %v486_v39 = vor.u32 1.1754944e-38, %v485_v25  ;;  %vm484_vm15 = vcmp.eq.f32.partialorder %v483_v30, 8.507059e+37  ;;  %v578_v51 = vmul.f32 %v577_v42, %v1444_v31 }
 0x34d   : > { %v702_v5 = vmax.f32 %v701_v20, 1.0  ;;  %p1113_p3 = por %p1112_p2, %p1111_p1 }
 0x34e   : > { %v807_v61 = vmul.f32 %v944_v54, %v578_v51 }
 0x34f   : > { %1058 = vrcp.f32 %v702_v5  ;;  %v714_v43 = vand.u32 2147483648, %v702_v5  ;;  %v712_v47 = vand.u32 2147483647, %v702_v5  ;;  %vm708_vm2 = vweird.f32 %v702_v5  ;;  %p1114_p4 = pnand %p1113_p3, %p1109_p0 }
 0x350   : > { %v1057_v3 = vpop.eup %1056 }
 0x351   : > { %v475_v19 = vmul.f32 %v1057_v3, %v473_v12  ;;  %vm480_vm10 = vweird.f32 %v1057_v3  ;;  %v715_v55 = vor.u32 1.1754944e-38, %v714_v43  ;;  %vm713_vm5 = vcmp.eq.f32.partialorder %v712_v47, 8.507059e+37 }
 0x352   : > { %vm481_vm14 = vmor %vm479_vm12, %vm480_vm10  ;;  %v948_v12 = vsel %vm824_vm7, 1.0, %v1161_v36 }
 0x353   : > { %v476_v22 = vsub.f32 1.0, %v475_v19  ;;  %s1459_s4 = spop %975 }
 0x354   : > { %s978_s5 = spop %977  ;;  %v763_v1 = vstv %s1459_s4 }
 0x355   : > { %v1059_v26 = vpop.eup %1058  ;;  %v477_v4 = vmul.f32 %v1057_v3, %v476_v22  ;;  %v792_v63 = vstv %s978_s5  ;;  %v764_v13 = vmul.f32 %v763_v1, %v1444_v31 }
 0x356   : > { %v704_v32 = vmul.f32 %v1059_v26, %v702_v5  ;;  %vm709_vm4 = vweird.f32 %v1059_v26  ;;  %v793_v11 = vmul.f32 %v792_v63, %v1444_v31 }
 0x357   : > { %v478_v35 = vadd.f32 %v1057_v3, %v477_v4  ;;  %vm710_vm3 = vmor %vm708_vm2, %vm709_vm4 }
 0x358   : > { %v705_v40 = vsub.f32 1.0, %v704_v32  ;;  %v827_v16 = vmul.f32 %v948_v12, %v793_v11 }
 0x359   : > { %v482_v41 = vsel %vm481_vm14, %v1057_v3, %v478_v35 }
 0x35a   : > { %v487_v44 = vsel %vm484_vm15, %v486_v39, %v482_v41  ;;  %v706_v46 = vmul.f32 %v1059_v26, %v705_v40 }
 0x35b   : > { %v488_v45 = vmul.f32 %v487_v44, %v472_v38  ;;  %v552_v49 = vmul.f32 %v551_v18, %v487_v44 }
 0x35c   : > { %v707_v52 = vadd.f32 %v1059_v26, %v706_v46 }
 0x35d   : > { %v490_v53 = vsel %vm1439_vm8, %v488_v45, 0.0  ;;  %v553_v37 = vsel %vm1439_vm8, %v552_v49, 0.0  ;;  %vm829_vm8 = vcmp.eq.s32.totalorder %v1299_v27, 7 }
 0x35e   : > { %v797_v57 = vmul.f32 %v942_v48, %v490_v53  ;;  %v711_v58 = vsel %vm710_vm3, %v1059_v26, %v707_v52  ;;  %v812_v6 = vmul.f32 %v945_v29, %v553_v37  ;;  %v949_v14 = vsel %vm829_vm8, 1.0, %v1161_v36 }
 0x35f   : > { %v716_v2 = vsel %vm713_vm5, %v715_v55, %v711_v58  ;;  %v832_v27 = vmul.f32 %v949_v14, %v764_v13 }
 0x360   : > { %v803_v59 = vadd.f32 %v802_v15, %v797_v57  ;;  %v717_v8 = vmul.f32 %v716_v2, %v691_v62 }
 0x362   : > { %v808_v7 = vadd.f32 %v807_v61, %v803_v59  ;;  %v822_v5 = vmul.f32 %v947_v50, %v717_v8 }
 0x364   : > { %v813_v10 = vadd.f32 %v812_v6, %v808_v7 }
 0x366   : > { %v818_v20 = vadd.f32 %v817_v9, %v813_v10 }
 0x368   : > { %v823_v3 = vadd.f32 %v822_v5, %v818_v20 }
 0x36a   : > { %v828_v17 = vadd.f32 %v827_v16, %v823_v3 }
 0x36c   : > { %v833_v19 = vadd.f32 %v832_v27, %v828_v17 }
 0x36e   : > { %834 = vst [vmem:[%s136_s10] sm:$0xff] %v833_v19 }
 0x36f   : > { %1117 = shalt.err (!%p1114_p4)
}
 0x370   : > { %981 = dma.vmem_to_hbm [thread:$0]  (%p1218_p10), %s849_s22, 128, %s851_s23, %s836_s16  }
 0x371 PF: > { %p992_p5 = scmp.ge.s32.totalorder %s1156_s9, 2  ;;  %s862_s20 = sand.u32 1, %s1144_s6  }
 0x372   : > { %s863_s2 = scalar_lea.sflag [#allocation4], %s862_s20 }
 0x373   : > { %p988_p7 = pnand %p992_p5, %p1222_p11 }
 0x375   : > { %p989_p8 = pneg %p988_p7 }
 0x377   : > { %1139 = dma.done.wait (%p989_p8), %s863_s2, 128  }
 0x378   : > { %1141 = vsyncadd (%p989_p8), %s863_s2, 4294967168  ;;  %p14_p9 = scmp.ge.s32.totalorder %s1198_s12, 10   ;;  %s1531_s6 = smov %s1148_s7 }
 0x379   : > { %s1532_s7 = smov %s1152_s8  ;;  %s1533_s8 = smov %s1210_s15 }
 0x37a   : > { %s1534_s9 = smov %s1198_s12  ;;  %16 = sbr.rel (!%p14_p9) target bundleno = 5 (0x5), region = 69 }
 0x37f   :  { %869 = vsyncpa [#allocation3], 1 }
 0x380   :  { %871 = vsyncpa [#allocation3 + $0x1], 1 }
 0x381   :  { %872 = vsyncpa [#allocation4], 1 }
 0x382   :  { %874 = vsyncpa [#allocation4 + $0x1], 1 }

</bundles_post_ra>
